<compile_context>
chip_gen: v6e
topology: v6e:2x2x1
jax: 0.10.0
libtpu: 0.0.40
codegen_flags: <defaults>
</compile_context>

<pallas_src>
import functools

import jax
import jax.numpy as jnp
from jax.experimental import pallas as pl
from jax.experimental.pallas import tpu as pltpu

# ----------------------------- mini BERT config -----------------------------
VOCAB = 100
HIDDEN = 32
N_LAYERS = 2
N_HEADS = 2
HEAD_DIM = HIDDEN // N_HEADS
INTERMEDIATE = 64
MAX_POS = 16
TYPE_VOCAB = 2
NUM_LABELS = 5
LN_EPS = 1e-12
IGNORE_INDEX = -100       # NerConfig.ignore_index (PyTorch CrossEntropyLoss default)
MASK_BIAS = -10000.0      # HF BERT additive attention-mask convention


# ------------------------------ fused kernel --------------------------------
def _fused_ner_kernel(x_ref, mask_ref, emb_g_ref, emb_b_ref,
                      wqkv_ref, bqkv_ref, wo_ref, bo_ref,
                      ln1g_ref, ln1b_ref,
                      wi_ref, bi_ref, wo2_ref, bo2_ref,
                      ln2g_ref, ln2b_ref,
                      clsw_ref, clsb_ref, labels_ref,
                      hidden_ref, logits_ref, loss_ref,
                      *, batch, seq):
    """Whole NER forward: emb-LN -> N BERT layers -> classifier -> CE loss."""
    scale = 1.0 / (HEAD_DIM ** 0.5)

    def layernorm(x, g, b):
        mu = jnp.mean(x, axis=-1, keepdims=True)
        xc = x - mu
        var = jnp.mean(xc * xc, axis=-1, keepdims=True)
        return xc * jax.lax.rsqrt(var + LN_EPS) * g + b

    def matmul_bf16(x, w_bf16):
        # MXU-native bf16 operands, f32 accumulate.
        return jnp.dot(x.astype(jnp.bfloat16), w_bf16,
                       preferred_element_type=jnp.float32)

    mask = mask_ref[...]                                     # (B, S) additive bias

    # --- embeddings LayerNorm (inputs already summed in glue) ---
    x = layernorm(x_ref[...], emb_g_ref[...], emb_b_ref[...])   # (M, H) f32

    # --- encoder layers (static unrolled loop) ---
    for l in range(N_LAYERS):
        # fused QKV projection: one (M, H) @ (H, 3H) matmul
        qkv = matmul_bf16(x, wqkv_ref[l]) + bqkv_ref[l]          # (M, 3H) f32

        # attention: static loop over (batch, head), lane-dense slices of qkv
        ctx_rows = []
        for b in range(batch):
            r0 = b * seq
            m_b = mask[b:b + 1, :]                               # (1, S)
            heads = []
            for h in range(N_HEADS):
                c0 = h * HEAD_DIM
                q = qkv[r0:r0 + seq, c0:c0 + HEAD_DIM]                       # (S, Dh)
                k = qkv[r0:r0 + seq, HIDDEN + c0:HIDDEN + c0 + HEAD_DIM]     # (S, Dh)
                v = qkv[r0:r0 + seq, 2 * HIDDEN + c0:2 * HIDDEN + c0 + HEAD_DIM]
                s = jax.lax.dot_general(
                    q, k, (((1,), (1,)), ((), ())),
                    preferred_element_type=jnp.float32)          # (S, S)
                s = s * scale + m_b                              # mask over keys
                s_max = jnp.max(s, axis=-1, keepdims=True)
                e = jnp.exp(s - s_max)
                p = e / jnp.sum(e, axis=-1, keepdims=True)
                heads.append(jnp.dot(p, v, preferred_element_type=jnp.float32))
            ctx_rows.append(jnp.concatenate(heads, axis=-1))     # (S, H)
        ctx = jnp.concatenate(ctx_rows, axis=0)                  # (M, H)

        attn_out = matmul_bf16(ctx, wo_ref[l]) + bo_ref[l]
        x = layernorm(attn_out + x, ln1g_ref[l], ln1b_ref[l])

        # feed-forward
        h1 = matmul_bf16(x, wi_ref[l]) + bi_ref[l]
        # TODO(synk): HF BERT uses exact (erf) GELU; tanh approximation used here.
        h1 = jax.nn.gelu(h1, approximate=True)
        h2 = matmul_bf16(h1, wo2_ref[l]) + bo2_ref[l]
        x = layernorm(h2 + x, ln2g_ref[l], ln2b_ref[l])

    # dropout: identity in eval-mode deterministic forward
    hidden_ref[...] = x

    # --- classifier head ---
    logits = matmul_bf16(x, clsw_ref[...]) + clsb_ref[...]       # (M, num_labels)
    logits_ref[...] = logits

    # --- masked mean cross-entropy (ignore_index tokens excluded) ---
    labels = labels_ref[...]                                     # (M, 1) i32
    mx = jnp.max(logits, axis=-1, keepdims=True)
    lse = jnp.log(jnp.sum(jnp.exp(logits - mx), axis=-1, keepdims=True)) + mx
    cls_iota = jax.lax.broadcasted_iota(jnp.int32, logits.shape, 1)
    onehot = (cls_iota == labels).astype(jnp.float32)
    correct = jnp.sum(logits * onehot, axis=-1, keepdims=True)   # (M, 1)
    valid = (labels != IGNORE_INDEX).astype(jnp.float32)         # (M, 1)
    total = jnp.sum((lse - correct) * valid, keepdims=True).reshape(1, 1)
    count = jnp.sum(valid, keepdims=True).reshape(1, 1)
    loss_ref[...] = total / jnp.maximum(count, 1.0)


# ------------------------------- parameters ----------------------------------
def init_params(key):
    keys = iter(jax.random.split(key, 64))

    def nrm(shape):
        return jax.random.normal(next(keys), shape, jnp.float32) * 0.02

    def stack_nrm(shape):
        return jnp.stack([nrm(shape) for _ in range(N_LAYERS)])

    p = {
        "word_emb": nrm((VOCAB, HIDDEN)),
        "pos_emb": nrm((MAX_POS, HIDDEN)),
        "type_emb": nrm((TYPE_VOCAB, HIDDEN)),
        "emb_ln_g": jnp.ones((1, HIDDEN), jnp.float32),
        "emb_ln_b": jnp.zeros((1, HIDDEN), jnp.float32),
        # fused QKV weights (bf16 for the MXU), per-layer stacked
        "wqkv": stack_nrm((HIDDEN, 3 * HIDDEN)).astype(jnp.bfloat16),
        "bqkv": jnp.zeros((N_LAYERS, 1, 3 * HIDDEN), jnp.float32),
        "wo":   stack_nrm((HIDDEN, HIDDEN)).astype(jnp.bfloat16),
        "bo":   jnp.zeros((N_LAYERS, 1, HIDDEN), jnp.float32),
        "ln1_g": jnp.ones((N_LAYERS, 1, HIDDEN), jnp.float32),
        "ln1_b": jnp.zeros((N_LAYERS, 1, HIDDEN), jnp.float32),
        "wi":   stack_nrm((HIDDEN, INTERMEDIATE)).astype(jnp.bfloat16),
        "bi":   jnp.zeros((N_LAYERS, 1, INTERMEDIATE), jnp.float32),
        "wo2":  stack_nrm((INTERMEDIATE, HIDDEN)).astype(jnp.bfloat16),
        "bo2":  jnp.zeros((N_LAYERS, 1, HIDDEN), jnp.float32),
        "ln2_g": jnp.ones((N_LAYERS, 1, HIDDEN), jnp.float32),
        "ln2_b": jnp.zeros((N_LAYERS, 1, HIDDEN), jnp.float32),
    }
    # classifier: xavier_uniform weight, zero bias (matches NerModel._init_weights)
    limit = (6.0 / (HIDDEN + NUM_LABELS)) ** 0.5
    p["cls_w"] = jax.random.uniform(
        next(keys), (HIDDEN, NUM_LABELS), jnp.float32, -limit, limit
    ).astype(jnp.bfloat16)
    p["cls_b"] = jnp.zeros((1, NUM_LABELS), jnp.float32)
    return p


# --------------------------------- forward -----------------------------------
def ner_forward(params, input_ids, attention_mask=None, token_type_ids=None,
                labels=None):
    B, S = input_ids.shape
    M = B * S
    if attention_mask is None:
        attention_mask = jnp.ones((B, S), jnp.int32)
    if token_type_ids is None:
        token_type_ids = jnp.zeros((B, S), jnp.int32)

    # Embedding-table gathers stay in XLA glue; everything else is one fused
    # VMEM-resident Pallas kernel.
    we = jnp.take(params["word_emb"], input_ids, axis=0)              # [B,S,H]
    pe = params["pos_emb"][:S][None]                                  # [1,S,H]
    te = jnp.take(params["type_emb"], token_type_ids, axis=0)         # [B,S,H]
    x_emb = (we + pe + te).reshape(M, HIDDEN)

    mask_bias = (1.0 - attention_mask.astype(jnp.float32)) * MASK_BIAS  # [B,S]

    have_labels = labels is not None
    if have_labels:
        labels2d = labels.reshape(M, 1).astype(jnp.int32)
    else:
        labels2d = jnp.full((M, 1), IGNORE_INDEX, jnp.int32)

    vmem = functools.partial(pl.BlockSpec, memory_space=pltpu.MemorySpace.VMEM)
    n_inputs = 19
    hidden, logits, loss = pl.pallas_call(
        functools.partial(_fused_ner_kernel, batch=B, seq=S),
        out_shape=(
            jax.ShapeDtypeStruct((M, HIDDEN), jnp.float32),
            jax.ShapeDtypeStruct((M, NUM_LABELS), jnp.float32),
            jax.ShapeDtypeStruct((1, 1), jnp.float32),
        ),
        in_specs=[vmem() for _ in range(n_inputs)],
        out_specs=(vmem(), vmem(), vmem()),
    )(x_emb, mask_bias,
      params["emb_ln_g"], params["emb_ln_b"],
      params["wqkv"], params["bqkv"], params["wo"], params["bo"],
      params["ln1_g"], params["ln1_b"],
      params["wi"], params["bi"], params["wo2"], params["bo2"],
      params["ln2_g"], params["ln2_b"],
      params["cls_w"], params["cls_b"], labels2d)

    res = {
        "logits": logits.reshape(B, S, NUM_LABELS),
        "hidden_states": hidden.reshape(B, S, HIDDEN),
    }
    if have_labels:
        res["loss"] = loss[0, 0]
    return res


# ----------------------------------- main -------------------------------------
if __name__ == "__main__":
    key = jax.random.PRNGKey(0)
    pkey, dkey = jax.random.split(key)
    params = init_params(pkey)

    B, S = 2, 8
    k1, k2 = jax.random.split(dkey)
    input_ids = jax.random.randint(k1, (B, S), 0, VOCAB, dtype=jnp.int32)
    attention_mask = jnp.ones((B, S), jnp.int32)
    token_type_ids = jnp.zeros((B, S), jnp.int32)
    labels = jax.random.randint(k2, (B, S), 0, NUM_LABELS, dtype=jnp.int32)
    labels = labels.at[:, -2:].set(IGNORE_INDEX)  # exercise ignore_index path

    fwd = jax.jit(ner_forward)
    out = fwd(params, input_ids, attention_mask, token_type_ids, labels)
    out = jax.block_until_ready(out)

    assert out["logits"].shape == (B, S, NUM_LABELS)
    assert out["hidden_states"].shape == (B, S, HIDDEN)
    assert out["loss"].shape == ()
    assert bool(jnp.isfinite(out["loss"]))
    print("KERNEL_OK")
</pallas_src>

<mosaic_0001>
module attributes {stable_mosaic.version = 11 : i64} {
  func.func @_fused_ner_kernel(%arg0: memref<16x32xf32, #tpu.memory_space<vmem>>, %arg1: memref<2x8xf32, #tpu.memory_space<vmem>>, %arg2: memref<1x32xf32, #tpu.memory_space<vmem>>, %arg3: memref<1x32xf32, #tpu.memory_space<vmem>>, %arg4: memref<2x32x96xbf16, #tpu.memory_space<vmem>>, %arg5: memref<2x1x96xf32, #tpu.memory_space<vmem>>, %arg6: memref<2x32x32xbf16, #tpu.memory_space<vmem>>, %arg7: memref<2x1x32xf32, #tpu.memory_space<vmem>>, %arg8: memref<2x1x32xf32, #tpu.memory_space<vmem>>, %arg9: memref<2x1x32xf32, #tpu.memory_space<vmem>>, %arg10: memref<2x32x64xbf16, #tpu.memory_space<vmem>>, %arg11: memref<2x1x64xf32, #tpu.memory_space<vmem>>, %arg12: memref<2x64x32xbf16, #tpu.memory_space<vmem>>, %arg13: memref<2x1x32xf32, #tpu.memory_space<vmem>>, %arg14: memref<2x1x32xf32, #tpu.memory_space<vmem>>, %arg15: memref<2x1x32xf32, #tpu.memory_space<vmem>>, %arg16: memref<32x5xbf16, #tpu.memory_space<vmem>>, %arg17: memref<1x5xf32, #tpu.memory_space<vmem>>, %arg18: memref<16x1xi32, #tpu.memory_space<vmem>>, %arg19: memref<16x32xf32, #tpu.memory_space<vmem>>, %arg20: memref<16x5xf32, #tpu.memory_space<vmem>>, %arg21: memref<1x1xf32, #tpu.memory_space<vmem>>) attributes {dimension_semantics = [], scalar_prefetch = 0 : i64, scratch_operands = 0 : i64, tpu.core_type = #tpu.core_type<tc>} {
    %c0 = arith.constant 0 : index
    %c0_0 = arith.constant 0 : index
    %0 = vector.load %arg1[%c0, %c0_0] : memref<2x8xf32, #tpu.memory_space<vmem>>, vector<2x8xf32>
    %c0_1 = arith.constant 0 : index
    %c0_2 = arith.constant 0 : index
    %1 = vector.load %arg0[%c0_1, %c0_2] : memref<16x32xf32, #tpu.memory_space<vmem>>, vector<16x32xf32>
    %c0_3 = arith.constant 0 : index
    %c0_4 = arith.constant 0 : index
    %2 = vector.load %arg2[%c0_3, %c0_4] : memref<1x32xf32, #tpu.memory_space<vmem>>, vector<1x32xf32>
    %c0_5 = arith.constant 0 : index
    %c0_6 = arith.constant 0 : index
    %3 = vector.load %arg3[%c0_5, %c0_6] : memref<1x32xf32, #tpu.memory_space<vmem>>, vector<1x32xf32>
    %cst = arith.constant dense<0.000000e+00> : vector<16xf32>
    %4 = vector.multi_reduction <add>, %1, %cst [1] : vector<16x32xf32> to vector<16xf32>
    %5 = vector.shape_cast %4 : vector<16xf32> to vector<16x1xf32>
    %cst_7 = arith.constant 3.200000e+01 : f32
    %6 = vector.broadcast %cst_7 : f32 to vector<16x1xf32>
    %7 = arith.divf %5, %6 : vector<16x1xf32>
    %8 = vector.broadcast %7 : vector<16x1xf32> to vector<16x32xf32>
    %9 = arith.subf %1, %8 : vector<16x32xf32>
    %10 = arith.mulf %9, %9 : vector<16x32xf32>
    %cst_8 = arith.constant dense<0.000000e+00> : vector<16xf32>
    %11 = vector.multi_reduction <add>, %10, %cst_8 [1] : vector<16x32xf32> to vector<16xf32>
    %12 = vector.shape_cast %11 : vector<16xf32> to vector<16x1xf32>
    %cst_9 = arith.constant 3.200000e+01 : f32
    %13 = vector.broadcast %cst_9 : f32 to vector<16x1xf32>
    %14 = arith.divf %12, %13 : vector<16x1xf32>
    %cst_10 = arith.constant 9.99999996E-13 : f32
    %15 = vector.broadcast %cst_10 : f32 to vector<16x1xf32>
    %16 = arith.addf %14, %15 : vector<16x1xf32>
    %17 = math.rsqrt %16 : vector<16x1xf32>
    %18 = vector.broadcast %17 : vector<16x1xf32> to vector<16x32xf32>
    %19 = arith.mulf %9, %18 : vector<16x32xf32>
    %20 = vector.broadcast %2 : vector<1x32xf32> to vector<16x32xf32>
    %21 = arith.mulf %19, %20 : vector<16x32xf32>
    %22 = vector.broadcast %3 : vector<1x32xf32> to vector<16x32xf32>
    %23 = arith.addf %21, %22 : vector<16x32xf32>
    %c0_11 = arith.constant 0 : index
    %c0_12 = arith.constant 0 : index
    %c0_13 = arith.constant 0 : index
    %24 = vector.load %arg4[%c0_11, %c0_12, %c0_13] : memref<2x32x96xbf16, #tpu.memory_space<vmem>>, vector<1x32x96xbf16>
    %25 = vector.shape_cast %24 : vector<1x32x96xbf16> to vector<32x96xbf16>
    %26 = arith.truncf %23 : vector<16x32xf32> to vector<16x32xbf16>
    %cst_14 = arith.constant dense<0.000000e+00> : vector<16x96xf32>
    %27 = tpu.matmul %26, %25, %cst_14 {dimension_numbers = #tpu.dot_dimension_numbers<[1], [0], [0], [1], [0, 0, 1, 1], [], []>} : vector<16x32xbf16>, vector<32x96xbf16>, vector<16x96xf32> -> vector<16x96xf32>
    %c0_15 = arith.constant 0 : index
    %c0_16 = arith.constant 0 : index
    %c0_17 = arith.constant 0 : index
    %28 = vector.load %arg5[%c0_15, %c0_16, %c0_17] : memref<2x1x96xf32, #tpu.memory_space<vmem>>, vector<1x1x96xf32>
    %29 = vector.shape_cast %28 : vector<1x1x96xf32> to vector<1x96xf32>
    %30 = vector.broadcast %29 : vector<1x96xf32> to vector<16x96xf32>
    %31 = arith.addf %27, %30 : vector<16x96xf32>
    %32 = vector.extract_strided_slice %0 {offsets = [0, 0], sizes = [1, 8], strides = [1, 1]} : vector<2x8xf32> to vector<1x8xf32>
    %33 = vector.extract_strided_slice %31 {offsets = [0, 0], sizes = [8, 16], strides = [1, 1]} : vector<16x96xf32> to vector<8x16xf32>
    %34 = vector.extract_strided_slice %31 {offsets = [0, 32], sizes = [8, 16], strides = [1, 1]} : vector<16x96xf32> to vector<8x16xf32>
    %35 = vector.extract_strided_slice %31 {offsets = [0, 64], sizes = [8, 16], strides = [1, 1]} : vector<16x96xf32> to vector<8x16xf32>
    %cst_18 = arith.constant dense<0.000000e+00> : vector<8x8xf32>
    %36 = tpu.matmul %33, %34, %cst_18 {dimension_numbers = #tpu.dot_dimension_numbers<[1], [1], [0], [0], [0, 0, 1, 0], [], []>} : vector<8x16xf32>, vector<8x16xf32>, vector<8x8xf32> -> vector<8x8xf32>
    %cst_19 = arith.constant 2.500000e-01 : f32
    %37 = vector.broadcast %cst_19 : f32 to vector<8x8xf32>
    %38 = arith.mulf %36, %37 : vector<8x8xf32>
    %39 = vector.broadcast %32 : vector<1x8xf32> to vector<8x8xf32>
    %40 = arith.addf %38, %39 : vector<8x8xf32>
    %cst_20 = arith.constant dense<0xFF800000> : vector<8xf32>
    %41 = vector.multi_reduction <maximumf>, %40, %cst_20 [1] : vector<8x8xf32> to vector<8xf32>
    %42 = vector.shape_cast %41 : vector<8xf32> to vector<8x1xf32>
    %43 = vector.broadcast %42 : vector<8x1xf32> to vector<8x8xf32>
    %44 = arith.subf %40, %43 : vector<8x8xf32>
    %45 = math.exp %44 : vector<8x8xf32>
    %cst_21 = arith.constant dense<0.000000e+00> : vector<8xf32>
    %46 = vector.multi_reduction <add>, %45, %cst_21 [1] : vector<8x8xf32> to vector<8xf32>
    %47 = vector.shape_cast %46 : vector<8xf32> to vector<8x1xf32>
    %48 = vector.broadcast %47 : vector<8x1xf32> to vector<8x8xf32>
    %49 = arith.divf %45, %48 : vector<8x8xf32>
    %cst_22 = arith.constant dense<0.000000e+00> : vector<8x16xf32>
    %50 = tpu.matmul %49, %35, %cst_22 {dimension_numbers = #tpu.dot_dimension_numbers<[1], [0], [0], [1], [0, 0, 1, 1], [], []>} : vector<8x8xf32>, vector<8x16xf32>, vector<8x16xf32> -> vector<8x16xf32>
    %51 = vector.extract_strided_slice %31 {offsets = [0, 16], sizes = [8, 16], strides = [1, 1]} : vector<16x96xf32> to vector<8x16xf32>
    %52 = vector.extract_strided_slice %31 {offsets = [0, 48], sizes = [8, 16], strides = [1, 1]} : vector<16x96xf32> to vector<8x16xf32>
    %53 = vector.extract_strided_slice %31 {offsets = [0, 80], sizes = [8, 16], strides = [1, 1]} : vector<16x96xf32> to vector<8x16xf32>
    %cst_23 = arith.constant dense<0.000000e+00> : vector<8x8xf32>
    %54 = tpu.matmul %51, %52, %cst_23 {dimension_numbers = #tpu.dot_dimension_numbers<[1], [1], [0], [0], [0, 0, 1, 0], [], []>} : vector<8x16xf32>, vector<8x16xf32>, vector<8x8xf32> -> vector<8x8xf32>
    %cst_24 = arith.constant 2.500000e-01 : f32
    %55 = vector.broadcast %cst_24 : f32 to vector<8x8xf32>
    %56 = arith.mulf %54, %55 : vector<8x8xf32>
    %57 = vector.broadcast %32 : vector<1x8xf32> to vector<8x8xf32>
    %58 = arith.addf %56, %57 : vector<8x8xf32>
    %cst_25 = arith.constant dense<0xFF800000> : vector<8xf32>
    %59 = vector.multi_reduction <maximumf>, %58, %cst_25 [1] : vector<8x8xf32> to vector<8xf32>
    %60 = vector.shape_cast %59 : vector<8xf32> to vector<8x1xf32>
    %61 = vector.broadcast %60 : vector<8x1xf32> to vector<8x8xf32>
    %62 = arith.subf %58, %61 : vector<8x8xf32>
    %63 = math.exp %62 : vector<8x8xf32>
    %cst_26 = arith.constant dense<0.000000e+00> : vector<8xf32>
    %64 = vector.multi_reduction <add>, %63, %cst_26 [1] : vector<8x8xf32> to vector<8xf32>
    %65 = vector.shape_cast %64 : vector<8xf32> to vector<8x1xf32>
    %66 = vector.broadcast %65 : vector<8x1xf32> to vector<8x8xf32>
    %67 = arith.divf %63, %66 : vector<8x8xf32>
    %cst_27 = arith.constant dense<0.000000e+00> : vector<8x16xf32>
    %68 = tpu.matmul %67, %53, %cst_27 {dimension_numbers = #tpu.dot_dimension_numbers<[1], [0], [0], [1], [0, 0, 1, 1], [], []>} : vector<8x8xf32>, vector<8x16xf32>, vector<8x16xf32> -> vector<8x16xf32>
    %69 = tpu.concatenate %50, %68 in 1 : vector<8x16xf32>, vector<8x16xf32> -> vector<8x32xf32>
    %70 = vector.extract_strided_slice %0 {offsets = [1, 0], sizes = [1, 8], strides = [1, 1]} : vector<2x8xf32> to vector<1x8xf32>
    %71 = vector.extract_strided_slice %31 {offsets = [8, 0], sizes = [8, 16], strides = [1, 1]} : vector<16x96xf32> to vector<8x16xf32>
    %72 = vector.extract_strided_slice %31 {offsets = [8, 32], sizes = [8, 16], strides = [1, 1]} : vector<16x96xf32> to vector<8x16xf32>
    %73 = vector.extract_strided_slice %31 {offsets = [8, 64], sizes = [8, 16], strides = [1, 1]} : vector<16x96xf32> to vector<8x16xf32>
    %cst_28 = arith.constant dense<0.000000e+00> : vector<8x8xf32>
    %74 = tpu.matmul %71, %72, %cst_28 {dimension_numbers = #tpu.dot_dimension_numbers<[1], [1], [0], [0], [0, 0, 1, 0], [], []>} : vector<8x16xf32>, vector<8x16xf32>, vector<8x8xf32> -> vector<8x8xf32>
    %cst_29 = arith.constant 2.500000e-01 : f32
    %75 = vector.broadcast %cst_29 : f32 to vector<8x8xf32>
    %76 = arith.mulf %74, %75 : vector<8x8xf32>
    %77 = vector.broadcast %70 : vector<1x8xf32> to vector<8x8xf32>
    %78 = arith.addf %76, %77 : vector<8x8xf32>
    %cst_30 = arith.constant dense<0xFF800000> : vector<8xf32>
    %79 = vector.multi_reduction <maximumf>, %78, %cst_30 [1] : vector<8x8xf32> to vector<8xf32>
    %80 = vector.shape_cast %79 : vector<8xf32> to vector<8x1xf32>
    %81 = vector.broadcast %80 : vector<8x1xf32> to vector<8x8xf32>
    %82 = arith.subf %78, %81 : vector<8x8xf32>
    %83 = math.exp %82 : vector<8x8xf32>
    %cst_31 = arith.constant dense<0.000000e+00> : vector<8xf32>
    %84 = vector.multi_reduction <add>, %83, %cst_31 [1] : vector<8x8xf32> to vector<8xf32>
    %85 = vector.shape_cast %84 : vector<8xf32> to vector<8x1xf32>
    %86 = vector.broadcast %85 : vector<8x1xf32> to vector<8x8xf32>
    %87 = arith.divf %83, %86 : vector<8x8xf32>
    %cst_32 = arith.constant dense<0.000000e+00> : vector<8x16xf32>
    %88 = tpu.matmul %87, %73, %cst_32 {dimension_numbers = #tpu.dot_dimension_numbers<[1], [0], [0], [1], [0, 0, 1, 1], [], []>} : vector<8x8xf32>, vector<8x16xf32>, vector<8x16xf32> -> vector<8x16xf32>
    %89 = vector.extract_strided_slice %31 {offsets = [8, 16], sizes = [8, 16], strides = [1, 1]} : vector<16x96xf32> to vector<8x16xf32>
    %90 = vector.extract_strided_slice %31 {offsets = [8, 48], sizes = [8, 16], strides = [1, 1]} : vector<16x96xf32> to vector<8x16xf32>
    %91 = vector.extract_strided_slice %31 {offsets = [8, 80], sizes = [8, 16], strides = [1, 1]} : vector<16x96xf32> to vector<8x16xf32>
    %cst_33 = arith.constant dense<0.000000e+00> : vector<8x8xf32>
    %92 = tpu.matmul %89, %90, %cst_33 {dimension_numbers = #tpu.dot_dimension_numbers<[1], [1], [0], [0], [0, 0, 1, 0], [], []>} : vector<8x16xf32>, vector<8x16xf32>, vector<8x8xf32> -> vector<8x8xf32>
    %cst_34 = arith.constant 2.500000e-01 : f32
    %93 = vector.broadcast %cst_34 : f32 to vector<8x8xf32>
    %94 = arith.mulf %92, %93 : vector<8x8xf32>
    %95 = vector.broadcast %70 : vector<1x8xf32> to vector<8x8xf32>
    %96 = arith.addf %94, %95 : vector<8x8xf32>
    %cst_35 = arith.constant dense<0xFF800000> : vector<8xf32>
    %97 = vector.multi_reduction <maximumf>, %96, %cst_35 [1] : vector<8x8xf32> to vector<8xf32>
    %98 = vector.shape_cast %97 : vector<8xf32> to vector<8x1xf32>
    %99 = vector.broadcast %98 : vector<8x1xf32> to vector<8x8xf32>
    %100 = arith.subf %96, %99 : vector<8x8xf32>
    %101 = math.exp %100 : vector<8x8xf32>
    %cst_36 = arith.constant dense<0.000000e+00> : vector<8xf32>
    %102 = vector.multi_reduction <add>, %101, %cst_36 [1] : vector<8x8xf32> to vector<8xf32>
    %103 = vector.shape_cast %102 : vector<8xf32> to vector<8x1xf32>
    %104 = vector.broadcast %103 : vector<8x1xf32> to vector<8x8xf32>
    %105 = arith.divf %101, %104 : vector<8x8xf32>
    %cst_37 = arith.constant dense<0.000000e+00> : vector<8x16xf32>
    %106 = tpu.matmul %105, %91, %cst_37 {dimension_numbers = #tpu.dot_dimension_numbers<[1], [0], [0], [1], [0, 0, 1, 1], [], []>} : vector<8x8xf32>, vector<8x16xf32>, vector<8x16xf32> -> vector<8x16xf32>
    %107 = tpu.concatenate %88, %106 in 1 : vector<8x16xf32>, vector<8x16xf32> -> vector<8x32xf32>
    %108 = tpu.concatenate %69, %107 in 0 : vector<8x32xf32>, vector<8x32xf32> -> vector<16x32xf32>
    %c0_38 = arith.constant 0 : index
    %c0_39 = arith.constant 0 : index
    %c0_40 = arith.constant 0 : index
    %109 = vector.load %arg6[%c0_38, %c0_39, %c0_40] : memref<2x32x32xbf16, #tpu.memory_space<vmem>>, vector<1x32x32xbf16>
    %110 = vector.shape_cast %109 : vector<1x32x32xbf16> to vector<32x32xbf16>
    %111 = arith.truncf %108 : vector<16x32xf32> to vector<16x32xbf16>
    %cst_41 = arith.constant dense<0.000000e+00> : vector<16x32xf32>
    %112 = tpu.matmul %111, %110, %cst_41 {dimension_numbers = #tpu.dot_dimension_numbers<[1], [0], [0], [1], [0, 0, 1, 1], [], []>} : vector<16x32xbf16>, vector<32x32xbf16>, vector<16x32xf32> -> vector<16x32xf32>
    %c0_42 = arith.constant 0 : index
    %c0_43 = arith.constant 0 : index
    %c0_44 = arith.constant 0 : index
    %113 = vector.load %arg7[%c0_42, %c0_43, %c0_44] : memref<2x1x32xf32, #tpu.memory_space<vmem>>, vector<1x1x32xf32>
    %114 = vector.shape_cast %113 : vector<1x1x32xf32> to vector<1x32xf32>
    %115 = vector.broadcast %114 : vector<1x32xf32> to vector<16x32xf32>
    %116 = arith.addf %112, %115 : vector<16x32xf32>
    %117 = arith.addf %116, %23 : vector<16x32xf32>
    %c0_45 = arith.constant 0 : index
    %c0_46 = arith.constant 0 : index
    %c0_47 = arith.constant 0 : index
    %118 = vector.load %arg8[%c0_45, %c0_46, %c0_47] : memref<2x1x32xf32, #tpu.memory_space<vmem>>, vector<1x1x32xf32>
    %119 = vector.shape_cast %118 : vector<1x1x32xf32> to vector<1x32xf32>
    %c0_48 = arith.constant 0 : index
    %c0_49 = arith.constant 0 : index
    %c0_50 = arith.constant 0 : index
    %120 = vector.load %arg9[%c0_48, %c0_49, %c0_50] : memref<2x1x32xf32, #tpu.memory_space<vmem>>, vector<1x1x32xf32>
    %121 = vector.shape_cast %120 : vector<1x1x32xf32> to vector<1x32xf32>
    %cst_51 = arith.constant dense<0.000000e+00> : vector<16xf32>
    %122 = vector.multi_reduction <add>, %117, %cst_51 [1] : vector<16x32xf32> to vector<16xf32>
    %123 = vector.shape_cast %122 : vector<16xf32> to vector<16x1xf32>
    %cst_52 = arith.constant 3.200000e+01 : f32
    %124 = vector.broadcast %cst_52 : f32 to vector<16x1xf32>
    %125 = arith.divf %123, %124 : vector<16x1xf32>
    %126 = vector.broadcast %125 : vector<16x1xf32> to vector<16x32xf32>
    %127 = arith.subf %117, %126 : vector<16x32xf32>
    %128 = arith.mulf %127, %127 : vector<16x32xf32>
    %cst_53 = arith.constant dense<0.000000e+00> : vector<16xf32>
    %129 = vector.multi_reduction <add>, %128, %cst_53 [1] : vector<16x32xf32> to vector<16xf32>
    %130 = vector.shape_cast %129 : vector<16xf32> to vector<16x1xf32>
    %cst_54 = arith.constant 3.200000e+01 : f32
    %131 = vector.broadcast %cst_54 : f32 to vector<16x1xf32>
    %132 = arith.divf %130, %131 : vector<16x1xf32>
    %cst_55 = arith.constant 9.99999996E-13 : f32
    %133 = vector.broadcast %cst_55 : f32 to vector<16x1xf32>
    %134 = arith.addf %132, %133 : vector<16x1xf32>
    %135 = math.rsqrt %134 : vector<16x1xf32>
    %136 = vector.broadcast %135 : vector<16x1xf32> to vector<16x32xf32>
    %137 = arith.mulf %127, %136 : vector<16x32xf32>
    %138 = vector.broadcast %119 : vector<1x32xf32> to vector<16x32xf32>
    %139 = arith.mulf %137, %138 : vector<16x32xf32>
    %140 = vector.broadcast %121 : vector<1x32xf32> to vector<16x32xf32>
    %141 = arith.addf %139, %140 : vector<16x32xf32>
    %c0_56 = arith.constant 0 : index
    %c0_57 = arith.constant 0 : index
    %c0_58 = arith.constant 0 : index
    %142 = vector.load %arg10[%c0_56, %c0_57, %c0_58] : memref<2x32x64xbf16, #tpu.memory_space<vmem>>, vector<1x32x64xbf16>
    %143 = vector.shape_cast %142 : vector<1x32x64xbf16> to vector<32x64xbf16>
    %144 = arith.truncf %141 : vector<16x32xf32> to vector<16x32xbf16>
    %cst_59 = arith.constant dense<0.000000e+00> : vector<16x64xf32>
    %145 = tpu.matmul %144, %143, %cst_59 {dimension_numbers = #tpu.dot_dimension_numbers<[1], [0], [0], [1], [0, 0, 1, 1], [], []>} : vector<16x32xbf16>, vector<32x64xbf16>, vector<16x64xf32> -> vector<16x64xf32>
    %c0_60 = arith.constant 0 : index
    %c0_61 = arith.constant 0 : index
    %c0_62 = arith.constant 0 : index
    %146 = vector.load %arg11[%c0_60, %c0_61, %c0_62] : memref<2x1x64xf32, #tpu.memory_space<vmem>>, vector<1x1x64xf32>
    %147 = vector.shape_cast %146 : vector<1x1x64xf32> to vector<1x64xf32>
    %148 = vector.broadcast %147 : vector<1x64xf32> to vector<16x64xf32>
    %149 = arith.addf %145, %148 : vector<16x64xf32>
    %150 = arith.mulf %149, %149 : vector<16x64xf32>
    %151 = arith.mulf %149, %150 : vector<16x64xf32>
    %cst_63 = arith.constant 4.471500e-02 : f32
    %152 = vector.broadcast %cst_63 : f32 to vector<16x64xf32>
    %153 = arith.mulf %152, %151 : vector<16x64xf32>
    %154 = arith.addf %149, %153 : vector<16x64xf32>
    %cst_64 = arith.constant 0.797884583 : f32
    %155 = vector.broadcast %cst_64 : f32 to vector<16x64xf32>
    %156 = arith.mulf %155, %154 : vector<16x64xf32>
    %157 = math.tanh %156 : vector<16x64xf32>
    %cst_65 = arith.constant 1.000000e+00 : f32
    %158 = vector.broadcast %cst_65 : f32 to vector<16x64xf32>
    %159 = arith.addf %158, %157 : vector<16x64xf32>
    %cst_66 = arith.constant 5.000000e-01 : f32
    %160 = vector.broadcast %cst_66 : f32 to vector<16x64xf32>
    %161 = arith.mulf %160, %159 : vector<16x64xf32>
    %162 = arith.mulf %149, %161 : vector<16x64xf32>
    %c0_67 = arith.constant 0 : index
    %c0_68 = arith.constant 0 : index
    %c0_69 = arith.constant 0 : index
    %163 = vector.load %arg12[%c0_67, %c0_68, %c0_69] : memref<2x64x32xbf16, #tpu.memory_space<vmem>>, vector<1x64x32xbf16>
    %164 = vector.shape_cast %163 : vector<1x64x32xbf16> to vector<64x32xbf16>
    %165 = arith.truncf %162 : vector<16x64xf32> to vector<16x64xbf16>
    %cst_70 = arith.constant dense<0.000000e+00> : vector<16x32xf32>
    %166 = tpu.matmul %165, %164, %cst_70 {dimension_numbers = #tpu.dot_dimension_numbers<[1], [0], [0], [1], [0, 0, 1, 1], [], []>} : vector<16x64xbf16>, vector<64x32xbf16>, vector<16x32xf32> -> vector<16x32xf32>
    %c0_71 = arith.constant 0 : index
    %c0_72 = arith.constant 0 : index
    %c0_73 = arith.constant 0 : index
    %167 = vector.load %arg13[%c0_71, %c0_72, %c0_73] : memref<2x1x32xf32, #tpu.memory_space<vmem>>, vector<1x1x32xf32>
    %168 = vector.shape_cast %167 : vector<1x1x32xf32> to vector<1x32xf32>
    %169 = vector.broadcast %168 : vector<1x32xf32> to vector<16x32xf32>
    %170 = arith.addf %166, %169 : vector<16x32xf32>
    %171 = arith.addf %170, %141 : vector<16x32xf32>
    %c0_74 = arith.constant 0 : index
    %c0_75 = arith.constant 0 : index
    %c0_76 = arith.constant 0 : index
    %172 = vector.load %arg14[%c0_74, %c0_75, %c0_76] : memref<2x1x32xf32, #tpu.memory_space<vmem>>, vector<1x1x32xf32>
    %173 = vector.shape_cast %172 : vector<1x1x32xf32> to vector<1x32xf32>
    %c0_77 = arith.constant 0 : index
    %c0_78 = arith.constant 0 : index
    %c0_79 = arith.constant 0 : index
    %174 = vector.load %arg15[%c0_77, %c0_78, %c0_79] : memref<2x1x32xf32, #tpu.memory_space<vmem>>, vector<1x1x32xf32>
    %175 = vector.shape_cast %174 : vector<1x1x32xf32> to vector<1x32xf32>
    %cst_80 = arith.constant dense<0.000000e+00> : vector<16xf32>
    %176 = vector.multi_reduction <add>, %171, %cst_80 [1] : vector<16x32xf32> to vector<16xf32>
    %177 = vector.shape_cast %176 : vector<16xf32> to vector<16x1xf32>
    %cst_81 = arith.constant 3.200000e+01 : f32
    %178 = vector.broadcast %cst_81 : f32 to vector<16x1xf32>
    %179 = arith.divf %177, %178 : vector<16x1xf32>
    %180 = vector.broadcast %179 : vector<16x1xf32> to vector<16x32xf32>
    %181 = arith.subf %171, %180 : vector<16x32xf32>
    %182 = arith.mulf %181, %181 : vector<16x32xf32>
    %cst_82 = arith.constant dense<0.000000e+00> : vector<16xf32>
    %183 = vector.multi_reduction <add>, %182, %cst_82 [1] : vector<16x32xf32> to vector<16xf32>
    %184 = vector.shape_cast %183 : vector<16xf32> to vector<16x1xf32>
    %cst_83 = arith.constant 3.200000e+01 : f32
    %185 = vector.broadcast %cst_83 : f32 to vector<16x1xf32>
    %186 = arith.divf %184, %185 : vector<16x1xf32>
    %cst_84 = arith.constant 9.99999996E-13 : f32
    %187 = vector.broadcast %cst_84 : f32 to vector<16x1xf32>
    %188 = arith.addf %186, %187 : vector<16x1xf32>
    %189 = math.rsqrt %188 : vector<16x1xf32>
    %190 = vector.broadcast %189 : vector<16x1xf32> to vector<16x32xf32>
    %191 = arith.mulf %181, %190 : vector<16x32xf32>
    %192 = vector.broadcast %173 : vector<1x32xf32> to vector<16x32xf32>
    %193 = arith.mulf %191, %192 : vector<16x32xf32>
    %194 = vector.broadcast %175 : vector<1x32xf32> to vector<16x32xf32>
    %195 = arith.addf %193, %194 : vector<16x32xf32>
    %c1 = arith.constant 1 : index
    %c0_85 = arith.constant 0 : index
    %c0_86 = arith.constant 0 : index
    %196 = vector.load %arg4[%c1, %c0_85, %c0_86] : memref<2x32x96xbf16, #tpu.memory_space<vmem>>, vector<1x32x96xbf16>
    %197 = vector.shape_cast %196 : vector<1x32x96xbf16> to vector<32x96xbf16>
    %198 = arith.truncf %195 : vector<16x32xf32> to vector<16x32xbf16>
    %cst_87 = arith.constant dense<0.000000e+00> : vector<16x96xf32>
    %199 = tpu.matmul %198, %197, %cst_87 {dimension_numbers = #tpu.dot_dimension_numbers<[1], [0], [0], [1], [0, 0, 1, 1], [], []>} : vector<16x32xbf16>, vector<32x96xbf16>, vector<16x96xf32> -> vector<16x96xf32>
    %c1_88 = arith.constant 1 : index
    %c0_89 = arith.constant 0 : index
    %c0_90 = arith.constant 0 : index
    %200 = vector.load %arg5[%c1_88, %c0_89, %c0_90] : memref<2x1x96xf32, #tpu.memory_space<vmem>>, vector<1x1x96xf32>
    %201 = vector.shape_cast %200 : vector<1x1x96xf32> to vector<1x96xf32>
    %202 = vector.broadcast %201 : vector<1x96xf32> to vector<16x96xf32>
    %203 = arith.addf %199, %202 : vector<16x96xf32>
    %204 = vector.extract_strided_slice %0 {offsets = [0, 0], sizes = [1, 8], strides = [1, 1]} : vector<2x8xf32> to vector<1x8xf32>
    %205 = vector.extract_strided_slice %203 {offsets = [0, 0], sizes = [8, 16], strides = [1, 1]} : vector<16x96xf32> to vector<8x16xf32>
    %206 = vector.extract_strided_slice %203 {offsets = [0, 32], sizes = [8, 16], strides = [1, 1]} : vector<16x96xf32> to vector<8x16xf32>
    %207 = vector.extract_strided_slice %203 {offsets = [0, 64], sizes = [8, 16], strides = [1, 1]} : vector<16x96xf32> to vector<8x16xf32>
    %cst_91 = arith.constant dense<0.000000e+00> : vector<8x8xf32>
    %208 = tpu.matmul %205, %206, %cst_91 {dimension_numbers = #tpu.dot_dimension_numbers<[1], [1], [0], [0], [0, 0, 1, 0], [], []>} : vector<8x16xf32>, vector<8x16xf32>, vector<8x8xf32> -> vector<8x8xf32>
    %cst_92 = arith.constant 2.500000e-01 : f32
    %209 = vector.broadcast %cst_92 : f32 to vector<8x8xf32>
    %210 = arith.mulf %208, %209 : vector<8x8xf32>
    %211 = vector.broadcast %204 : vector<1x8xf32> to vector<8x8xf32>
    %212 = arith.addf %210, %211 : vector<8x8xf32>
    %cst_93 = arith.constant dense<0xFF800000> : vector<8xf32>
    %213 = vector.multi_reduction <maximumf>, %212, %cst_93 [1] : vector<8x8xf32> to vector<8xf32>
    %214 = vector.shape_cast %213 : vector<8xf32> to vector<8x1xf32>
    %215 = vector.broadcast %214 : vector<8x1xf32> to vector<8x8xf32>
    %216 = arith.subf %212, %215 : vector<8x8xf32>
    %217 = math.exp %216 : vector<8x8xf32>
    %cst_94 = arith.constant dense<0.000000e+00> : vector<8xf32>
    %218 = vector.multi_reduction <add>, %217, %cst_94 [1] : vector<8x8xf32> to vector<8xf32>
    %219 = vector.shape_cast %218 : vector<8xf32> to vector<8x1xf32>
    %220 = vector.broadcast %219 : vector<8x1xf32> to vector<8x8xf32>
    %221 = arith.divf %217, %220 : vector<8x8xf32>
    %cst_95 = arith.constant dense<0.000000e+00> : vector<8x16xf32>
    %222 = tpu.matmul %221, %207, %cst_95 {dimension_numbers = #tpu.dot_dimension_numbers<[1], [0], [0], [1], [0, 0, 1, 1], [], []>} : vector<8x8xf32>, vector<8x16xf32>, vector<8x16xf32> -> vector<8x16xf32>
    %223 = vector.extract_strided_slice %203 {offsets = [0, 16], sizes = [8, 16], strides = [1, 1]} : vector<16x96xf32> to vector<8x16xf32>
    %224 = vector.extract_strided_slice %203 {offsets = [0, 48], sizes = [8, 16], strides = [1, 1]} : vector<16x96xf32> to vector<8x16xf32>
    %225 = vector.extract_strided_slice %203 {offsets = [0, 80], sizes = [8, 16], strides = [1, 1]} : vector<16x96xf32> to vector<8x16xf32>
    %cst_96 = arith.constant dense<0.000000e+00> : vector<8x8xf32>
    %226 = tpu.matmul %223, %224, %cst_96 {dimension_numbers = #tpu.dot_dimension_numbers<[1], [1], [0], [0], [0, 0, 1, 0], [], []>} : vector<8x16xf32>, vector<8x16xf32>, vector<8x8xf32> -> vector<8x8xf32>
    %cst_97 = arith.constant 2.500000e-01 : f32
    %227 = vector.broadcast %cst_97 : f32 to vector<8x8xf32>
    %228 = arith.mulf %226, %227 : vector<8x8xf32>
    %229 = vector.broadcast %204 : vector<1x8xf32> to vector<8x8xf32>
    %230 = arith.addf %228, %229 : vector<8x8xf32>
    %cst_98 = arith.constant dense<0xFF800000> : vector<8xf32>
    %231 = vector.multi_reduction <maximumf>, %230, %cst_98 [1] : vector<8x8xf32> to vector<8xf32>
    %232 = vector.shape_cast %231 : vector<8xf32> to vector<8x1xf32>
    %233 = vector.broadcast %232 : vector<8x1xf32> to vector<8x8xf32>
    %234 = arith.subf %230, %233 : vector<8x8xf32>
    %235 = math.exp %234 : vector<8x8xf32>
    %cst_99 = arith.constant dense<0.000000e+00> : vector<8xf32>
    %236 = vector.multi_reduction <add>, %235, %cst_99 [1] : vector<8x8xf32> to vector<8xf32>
    %237 = vector.shape_cast %236 : vector<8xf32> to vector<8x1xf32>
    %238 = vector.broadcast %237 : vector<8x1xf32> to vector<8x8xf32>
    %239 = arith.divf %235, %238 : vector<8x8xf32>
    %cst_100 = arith.constant dense<0.000000e+00> : vector<8x16xf32>
    %240 = tpu.matmul %239, %225, %cst_100 {dimension_numbers = #tpu.dot_dimension_numbers<[1], [0], [0], [1], [0, 0, 1, 1], [], []>} : vector<8x8xf32>, vector<8x16xf32>, vector<8x16xf32> -> vector<8x16xf32>
    %241 = tpu.concatenate %222, %240 in 1 : vector<8x16xf32>, vector<8x16xf32> -> vector<8x32xf32>
    %242 = vector.extract_strided_slice %0 {offsets = [1, 0], sizes = [1, 8], strides = [1, 1]} : vector<2x8xf32> to vector<1x8xf32>
    %243 = vector.extract_strided_slice %203 {offsets = [8, 0], sizes = [8, 16], strides = [1, 1]} : vector<16x96xf32> to vector<8x16xf32>
    %244 = vector.extract_strided_slice %203 {offsets = [8, 32], sizes = [8, 16], strides = [1, 1]} : vector<16x96xf32> to vector<8x16xf32>
    %245 = vector.extract_strided_slice %203 {offsets = [8, 64], sizes = [8, 16], strides = [1, 1]} : vector<16x96xf32> to vector<8x16xf32>
    %cst_101 = arith.constant dense<0.000000e+00> : vector<8x8xf32>
    %246 = tpu.matmul %243, %244, %cst_101 {dimension_numbers = #tpu.dot_dimension_numbers<[1], [1], [0], [0], [0, 0, 1, 0], [], []>} : vector<8x16xf32>, vector<8x16xf32>, vector<8x8xf32> -> vector<8x8xf32>
    %cst_102 = arith.constant 2.500000e-01 : f32
    %247 = vector.broadcast %cst_102 : f32 to vector<8x8xf32>
    %248 = arith.mulf %246, %247 : vector<8x8xf32>
    %249 = vector.broadcast %242 : vector<1x8xf32> to vector<8x8xf32>
    %250 = arith.addf %248, %249 : vector<8x8xf32>
    %cst_103 = arith.constant dense<0xFF800000> : vector<8xf32>
    %251 = vector.multi_reduction <maximumf>, %250, %cst_103 [1] : vector<8x8xf32> to vector<8xf32>
    %252 = vector.shape_cast %251 : vector<8xf32> to vector<8x1xf32>
    %253 = vector.broadcast %252 : vector<8x1xf32> to vector<8x8xf32>
    %254 = arith.subf %250, %253 : vector<8x8xf32>
    %255 = math.exp %254 : vector<8x8xf32>
    %cst_104 = arith.constant dense<0.000000e+00> : vector<8xf32>
    %256 = vector.multi_reduction <add>, %255, %cst_104 [1] : vector<8x8xf32> to vector<8xf32>
    %257 = vector.shape_cast %256 : vector<8xf32> to vector<8x1xf32>
    %258 = vector.broadcast %257 : vector<8x1xf32> to vector<8x8xf32>
    %259 = arith.divf %255, %258 : vector<8x8xf32>
    %cst_105 = arith.constant dense<0.000000e+00> : vector<8x16xf32>
    %260 = tpu.matmul %259, %245, %cst_105 {dimension_numbers = #tpu.dot_dimension_numbers<[1], [0], [0], [1], [0, 0, 1, 1], [], []>} : vector<8x8xf32>, vector<8x16xf32>, vector<8x16xf32> -> vector<8x16xf32>
    %261 = vector.extract_strided_slice %203 {offsets = [8, 16], sizes = [8, 16], strides = [1, 1]} : vector<16x96xf32> to vector<8x16xf32>
    %262 = vector.extract_strided_slice %203 {offsets = [8, 48], sizes = [8, 16], strides = [1, 1]} : vector<16x96xf32> to vector<8x16xf32>
    %263 = vector.extract_strided_slice %203 {offsets = [8, 80], sizes = [8, 16], strides = [1, 1]} : vector<16x96xf32> to vector<8x16xf32>
    %cst_106 = arith.constant dense<0.000000e+00> : vector<8x8xf32>
    %264 = tpu.matmul %261, %262, %cst_106 {dimension_numbers = #tpu.dot_dimension_numbers<[1], [1], [0], [0], [0, 0, 1, 0], [], []>} : vector<8x16xf32>, vector<8x16xf32>, vector<8x8xf32> -> vector<8x8xf32>
    %cst_107 = arith.constant 2.500000e-01 : f32
    %265 = vector.broadcast %cst_107 : f32 to vector<8x8xf32>
    %266 = arith.mulf %264, %265 : vector<8x8xf32>
    %267 = vector.broadcast %242 : vector<1x8xf32> to vector<8x8xf32>
    %268 = arith.addf %266, %267 : vector<8x8xf32>
    %cst_108 = arith.constant dense<0xFF800000> : vector<8xf32>
    %269 = vector.multi_reduction <maximumf>, %268, %cst_108 [1] : vector<8x8xf32> to vector<8xf32>
    %270 = vector.shape_cast %269 : vector<8xf32> to vector<8x1xf32>
    %271 = vector.broadcast %270 : vector<8x1xf32> to vector<8x8xf32>
    %272 = arith.subf %268, %271 : vector<8x8xf32>
    %273 = math.exp %272 : vector<8x8xf32>
    %cst_109 = arith.constant dense<0.000000e+00> : vector<8xf32>
    %274 = vector.multi_reduction <add>, %273, %cst_109 [1] : vector<8x8xf32> to vector<8xf32>
    %275 = vector.shape_cast %274 : vector<8xf32> to vector<8x1xf32>
    %276 = vector.broadcast %275 : vector<8x1xf32> to vector<8x8xf32>
    %277 = arith.divf %273, %276 : vector<8x8xf32>
    %cst_110 = arith.constant dense<0.000000e+00> : vector<8x16xf32>
    %278 = tpu.matmul %277, %263, %cst_110 {dimension_numbers = #tpu.dot_dimension_numbers<[1], [0], [0], [1], [0, 0, 1, 1], [], []>} : vector<8x8xf32>, vector<8x16xf32>, vector<8x16xf32> -> vector<8x16xf32>
    %279 = tpu.concatenate %260, %278 in 1 : vector<8x16xf32>, vector<8x16xf32> -> vector<8x32xf32>
    %280 = tpu.concatenate %241, %279 in 0 : vector<8x32xf32>, vector<8x32xf32> -> vector<16x32xf32>
    %c1_111 = arith.constant 1 : index
    %c0_112 = arith.constant 0 : index
    %c0_113 = arith.constant 0 : index
    %281 = vector.load %arg6[%c1_111, %c0_112, %c0_113] : memref<2x32x32xbf16, #tpu.memory_space<vmem>>, vector<1x32x32xbf16>
    %282 = vector.shape_cast %281 : vector<1x32x32xbf16> to vector<32x32xbf16>
    %283 = arith.truncf %280 : vector<16x32xf32> to vector<16x32xbf16>
    %cst_114 = arith.constant dense<0.000000e+00> : vector<16x32xf32>
    %284 = tpu.matmul %283, %282, %cst_114 {dimension_numbers = #tpu.dot_dimension_numbers<[1], [0], [0], [1], [0, 0, 1, 1], [], []>} : vector<16x32xbf16>, vector<32x32xbf16>, vector<16x32xf32> -> vector<16x32xf32>
    %c1_115 = arith.constant 1 : index
    %c0_116 = arith.constant 0 : index
    %c0_117 = arith.constant 0 : index
    %285 = vector.load %arg7[%c1_115, %c0_116, %c0_117] : memref<2x1x32xf32, #tpu.memory_space<vmem>>, vector<1x1x32xf32>
    %286 = vector.shape_cast %285 : vector<1x1x32xf32> to vector<1x32xf32>
    %287 = vector.broadcast %286 : vector<1x32xf32> to vector<16x32xf32>
    %288 = arith.addf %284, %287 : vector<16x32xf32>
    %289 = arith.addf %288, %195 : vector<16x32xf32>
    %c1_118 = arith.constant 1 : index
    %c0_119 = arith.constant 0 : index
    %c0_120 = arith.constant 0 : index
    %290 = vector.load %arg8[%c1_118, %c0_119, %c0_120] : memref<2x1x32xf32, #tpu.memory_space<vmem>>, vector<1x1x32xf32>
    %291 = vector.shape_cast %290 : vector<1x1x32xf32> to vector<1x32xf32>
    %c1_121 = arith.constant 1 : index
    %c0_122 = arith.constant 0 : index
    %c0_123 = arith.constant 0 : index
    %292 = vector.load %arg9[%c1_121, %c0_122, %c0_123] : memref<2x1x32xf32, #tpu.memory_space<vmem>>, vector<1x1x32xf32>
    %293 = vector.shape_cast %292 : vector<1x1x32xf32> to vector<1x32xf32>
    %cst_124 = arith.constant dense<0.000000e+00> : vector<16xf32>
    %294 = vector.multi_reduction <add>, %289, %cst_124 [1] : vector<16x32xf32> to vector<16xf32>
    %295 = vector.shape_cast %294 : vector<16xf32> to vector<16x1xf32>
    %cst_125 = arith.constant 3.200000e+01 : f32
    %296 = vector.broadcast %cst_125 : f32 to vector<16x1xf32>
    %297 = arith.divf %295, %296 : vector<16x1xf32>
    %298 = vector.broadcast %297 : vector<16x1xf32> to vector<16x32xf32>
    %299 = arith.subf %289, %298 : vector<16x32xf32>
    %300 = arith.mulf %299, %299 : vector<16x32xf32>
    %cst_126 = arith.constant dense<0.000000e+00> : vector<16xf32>
    %301 = vector.multi_reduction <add>, %300, %cst_126 [1] : vector<16x32xf32> to vector<16xf32>
    %302 = vector.shape_cast %301 : vector<16xf32> to vector<16x1xf32>
    %cst_127 = arith.constant 3.200000e+01 : f32
    %303 = vector.broadcast %cst_127 : f32 to vector<16x1xf32>
    %304 = arith.divf %302, %303 : vector<16x1xf32>
    %cst_128 = arith.constant 9.99999996E-13 : f32
    %305 = vector.broadcast %cst_128 : f32 to vector<16x1xf32>
    %306 = arith.addf %304, %305 : vector<16x1xf32>
    %307 = math.rsqrt %306 : vector<16x1xf32>
    %308 = vector.broadcast %307 : vector<16x1xf32> to vector<16x32xf32>
    %309 = arith.mulf %299, %308 : vector<16x32xf32>
    %310 = vector.broadcast %291 : vector<1x32xf32> to vector<16x32xf32>
    %311 = arith.mulf %309, %310 : vector<16x32xf32>
    %312 = vector.broadcast %293 : vector<1x32xf32> to vector<16x32xf32>
    %313 = arith.addf %311, %312 : vector<16x32xf32>
    %c1_129 = arith.constant 1 : index
    %c0_130 = arith.constant 0 : index
    %c0_131 = arith.constant 0 : index
    %314 = vector.load %arg10[%c1_129, %c0_130, %c0_131] : memref<2x32x64xbf16, #tpu.memory_space<vmem>>, vector<1x32x64xbf16>
    %315 = vector.shape_cast %314 : vector<1x32x64xbf16> to vector<32x64xbf16>
    %316 = arith.truncf %313 : vector<16x32xf32> to vector<16x32xbf16>
    %cst_132 = arith.constant dense<0.000000e+00> : vector<16x64xf32>
    %317 = tpu.matmul %316, %315, %cst_132 {dimension_numbers = #tpu.dot_dimension_numbers<[1], [0], [0], [1], [0, 0, 1, 1], [], []>} : vector<16x32xbf16>, vector<32x64xbf16>, vector<16x64xf32> -> vector<16x64xf32>
    %c1_133 = arith.constant 1 : index
    %c0_134 = arith.constant 0 : index
    %c0_135 = arith.constant 0 : index
    %318 = vector.load %arg11[%c1_133, %c0_134, %c0_135] : memref<2x1x64xf32, #tpu.memory_space<vmem>>, vector<1x1x64xf32>
    %319 = vector.shape_cast %318 : vector<1x1x64xf32> to vector<1x64xf32>
    %320 = vector.broadcast %319 : vector<1x64xf32> to vector<16x64xf32>
    %321 = arith.addf %317, %320 : vector<16x64xf32>
    %322 = arith.mulf %321, %321 : vector<16x64xf32>
    %323 = arith.mulf %321, %322 : vector<16x64xf32>
    %cst_136 = arith.constant 4.471500e-02 : f32
    %324 = vector.broadcast %cst_136 : f32 to vector<16x64xf32>
    %325 = arith.mulf %324, %323 : vector<16x64xf32>
    %326 = arith.addf %321, %325 : vector<16x64xf32>
    %cst_137 = arith.constant 0.797884583 : f32
    %327 = vector.broadcast %cst_137 : f32 to vector<16x64xf32>
    %328 = arith.mulf %327, %326 : vector<16x64xf32>
    %329 = math.tanh %328 : vector<16x64xf32>
    %cst_138 = arith.constant 1.000000e+00 : f32
    %330 = vector.broadcast %cst_138 : f32 to vector<16x64xf32>
    %331 = arith.addf %330, %329 : vector<16x64xf32>
    %cst_139 = arith.constant 5.000000e-01 : f32
    %332 = vector.broadcast %cst_139 : f32 to vector<16x64xf32>
    %333 = arith.mulf %332, %331 : vector<16x64xf32>
    %334 = arith.mulf %321, %333 : vector<16x64xf32>
    %c1_140 = arith.constant 1 : index
    %c0_141 = arith.constant 0 : index
    %c0_142 = arith.constant 0 : index
    %335 = vector.load %arg12[%c1_140, %c0_141, %c0_142] : memref<2x64x32xbf16, #tpu.memory_space<vmem>>, vector<1x64x32xbf16>
    %336 = vector.shape_cast %335 : vector<1x64x32xbf16> to vector<64x32xbf16>
    %337 = arith.truncf %334 : vector<16x64xf32> to vector<16x64xbf16>
    %cst_143 = arith.constant dense<0.000000e+00> : vector<16x32xf32>
    %338 = tpu.matmul %337, %336, %cst_143 {dimension_numbers = #tpu.dot_dimension_numbers<[1], [0], [0], [1], [0, 0, 1, 1], [], []>} : vector<16x64xbf16>, vector<64x32xbf16>, vector<16x32xf32> -> vector<16x32xf32>
    %c1_144 = arith.constant 1 : index
    %c0_145 = arith.constant 0 : index
    %c0_146 = arith.constant 0 : index
    %339 = vector.load %arg13[%c1_144, %c0_145, %c0_146] : memref<2x1x32xf32, #tpu.memory_space<vmem>>, vector<1x1x32xf32>
    %340 = vector.shape_cast %339 : vector<1x1x32xf32> to vector<1x32xf32>
    %341 = vector.broadcast %340 : vector<1x32xf32> to vector<16x32xf32>
    %342 = arith.addf %338, %341 : vector<16x32xf32>
    %343 = arith.addf %342, %313 : vector<16x32xf32>
    %c1_147 = arith.constant 1 : index
    %c0_148 = arith.constant 0 : index
    %c0_149 = arith.constant 0 : index
    %344 = vector.load %arg14[%c1_147, %c0_148, %c0_149] : memref<2x1x32xf32, #tpu.memory_space<vmem>>, vector<1x1x32xf32>
    %345 = vector.shape_cast %344 : vector<1x1x32xf32> to vector<1x32xf32>
    %c1_150 = arith.constant 1 : index
    %c0_151 = arith.constant 0 : index
    %c0_152 = arith.constant 0 : index
    %346 = vector.load %arg15[%c1_150, %c0_151, %c0_152] : memref<2x1x32xf32, #tpu.memory_space<vmem>>, vector<1x1x32xf32>
    %347 = vector.shape_cast %346 : vector<1x1x32xf32> to vector<1x32xf32>
    %cst_153 = arith.constant dense<0.000000e+00> : vector<16xf32>
    %348 = vector.multi_reduction <add>, %343, %cst_153 [1] : vector<16x32xf32> to vector<16xf32>
    %349 = vector.shape_cast %348 : vector<16xf32> to vector<16x1xf32>
    %cst_154 = arith.constant 3.200000e+01 : f32
    %350 = vector.broadcast %cst_154 : f32 to vector<16x1xf32>
    %351 = arith.divf %349, %350 : vector<16x1xf32>
    %352 = vector.broadcast %351 : vector<16x1xf32> to vector<16x32xf32>
    %353 = arith.subf %343, %352 : vector<16x32xf32>
    %354 = arith.mulf %353, %353 : vector<16x32xf32>
    %cst_155 = arith.constant dense<0.000000e+00> : vector<16xf32>
    %355 = vector.multi_reduction <add>, %354, %cst_155 [1] : vector<16x32xf32> to vector<16xf32>
    %356 = vector.shape_cast %355 : vector<16xf32> to vector<16x1xf32>
    %cst_156 = arith.constant 3.200000e+01 : f32
    %357 = vector.broadcast %cst_156 : f32 to vector<16x1xf32>
    %358 = arith.divf %356, %357 : vector<16x1xf32>
    %cst_157 = arith.constant 9.99999996E-13 : f32
    %359 = vector.broadcast %cst_157 : f32 to vector<16x1xf32>
    %360 = arith.addf %358, %359 : vector<16x1xf32>
    %361 = math.rsqrt %360 : vector<16x1xf32>
    %362 = vector.broadcast %361 : vector<16x1xf32> to vector<16x32xf32>
    %363 = arith.mulf %353, %362 : vector<16x32xf32>
    %364 = vector.broadcast %345 : vector<1x32xf32> to vector<16x32xf32>
    %365 = arith.mulf %363, %364 : vector<16x32xf32>
    %366 = vector.broadcast %347 : vector<1x32xf32> to vector<16x32xf32>
    %367 = arith.addf %365, %366 : vector<16x32xf32>
    %c0_158 = arith.constant 0 : index
    %c0_159 = arith.constant 0 : index
    %368 = vector.load %arg19[%c0_158, %c0_159] : memref<16x32xf32, #tpu.memory_space<vmem>>, vector<16x32xf32>
    tpu.vector_store %arg19[%c0_158, %c0_159], %367 {strides = array<i32>} : memref<16x32xf32, #tpu.memory_space<vmem>>, vector<16x32xf32>,
    %c0_160 = arith.constant 0 : index
    %c0_161 = arith.constant 0 : index
    %369 = vector.load %arg16[%c0_160, %c0_161] : memref<32x5xbf16, #tpu.memory_space<vmem>>, vector<32x5xbf16>
    %370 = arith.truncf %367 : vector<16x32xf32> to vector<16x32xbf16>
    %cst_162 = arith.constant dense<0.000000e+00> : vector<16x5xf32>
    %371 = tpu.matmul %370, %369, %cst_162 {dimension_numbers = #tpu.dot_dimension_numbers<[1], [0], [0], [1], [0, 0, 1, 1], [], []>} : vector<16x32xbf16>, vector<32x5xbf16>, vector<16x5xf32> -> vector<16x5xf32>
    %c0_163 = arith.constant 0 : index
    %c0_164 = arith.constant 0 : index
    %372 = vector.load %arg17[%c0_163, %c0_164] : memref<1x5xf32, #tpu.memory_space<vmem>>, vector<1x5xf32>
    %373 = vector.broadcast %372 : vector<1x5xf32> to vector<16x5xf32>
    %374 = arith.addf %371, %373 : vector<16x5xf32>
    %c0_165 = arith.constant 0 : index
    %c0_166 = arith.constant 0 : index
    %375 = vector.load %arg20[%c0_165, %c0_166] : memref<16x5xf32, #tpu.memory_space<vmem>>, vector<16x5xf32>
    tpu.vector_store %arg20[%c0_165, %c0_166], %374 {strides = array<i32>} : memref<16x5xf32, #tpu.memory_space<vmem>>, vector<16x5xf32>,
    %c0_167 = arith.constant 0 : index
    %c0_168 = arith.constant 0 : index
    %376 = vector.load %arg18[%c0_167, %c0_168] : memref<16x1xi32, #tpu.memory_space<vmem>>, vector<16x1xi32>
    %cst_169 = arith.constant dense<0xFF800000> : vector<16xf32>
    %377 = vector.multi_reduction <maximumf>, %374, %cst_169 [1] : vector<16x5xf32> to vector<16xf32>
    %378 = vector.shape_cast %377 : vector<16xf32> to vector<16x1xf32>
    %379 = vector.broadcast %378 : vector<16x1xf32> to vector<16x5xf32>
    %380 = arith.subf %374, %379 : vector<16x5xf32>
    %381 = math.exp %380 : vector<16x5xf32>
    %cst_170 = arith.constant dense<0.000000e+00> : vector<16xf32>
    %382 = vector.multi_reduction <add>, %381, %cst_170 [1] : vector<16x5xf32> to vector<16xf32>
    %383 = vector.shape_cast %382 : vector<16xf32> to vector<16x1xf32>
    %384 = math.log %383 : vector<16x1xf32>
    %385 = arith.addf %384, %378 : vector<16x1xf32>
    %386 = tpu.iota {dimensions = array<i32: 1>} : vector<16x5xi32>
    %387 = vector.broadcast %376 : vector<16x1xi32> to vector<16x5xi32>
    %388 = arith.cmpi eq, %386, %387 : vector<16x5xi32>
    %389 = arith.extui %388 : vector<16x5xi1> to vector<16x5xi32>
    %390 = arith.sitofp %389 : vector<16x5xi32> to vector<16x5xf32>
    %391 = arith.mulf %374, %390 : vector<16x5xf32>
    %cst_171 = arith.constant dense<0.000000e+00> : vector<16xf32>
    %392 = vector.multi_reduction <add>, %391, %cst_171 [1] : vector<16x5xf32> to vector<16xf32>
    %393 = vector.shape_cast %392 : vector<16xf32> to vector<16x1xf32>
    %c-100_i32 = arith.constant -100 : i32
    %394 = vector.broadcast %c-100_i32 : i32 to vector<16x1xi32>
    %395 = arith.cmpi ne, %376, %394 : vector<16x1xi32>
    %396 = arith.extui %395 : vector<16x1xi1> to vector<16x1xi32>
    %397 = arith.sitofp %396 : vector<16x1xi32> to vector<16x1xf32>
    %398 = arith.subf %385, %393 : vector<16x1xf32>
    %399 = arith.mulf %398, %397 : vector<16x1xf32>
    %400 = vector.shape_cast %399 : vector<16x1xf32> to vector<1x16x1xf32>
    %cst_172 = arith.constant dense<0.000000e+00> : vector<1xf32>
    %401 = vector.multi_reduction <add>, %400, %cst_172 [1, 2] : vector<1x16x1xf32> to vector<1xf32>
    %402 = vector.shape_cast %401 : vector<1xf32> to vector<1x1x1xf32>
    %403 = vector.extract %402[0, 0, 0] : f32 from vector<1x1x1xf32>
    %404 = vector.broadcast %403 : f32 to vector<1x1xf32>
    %405 = vector.shape_cast %397 : vector<16x1xf32> to vector<1x16x1xf32>
    %cst_173 = arith.constant dense<0.000000e+00> : vector<1xf32>
    %406 = vector.multi_reduction <add>, %405, %cst_173 [1, 2] : vector<1x16x1xf32> to vector<1xf32>
    %407 = vector.shape_cast %406 : vector<1xf32> to vector<1x1x1xf32>
    %408 = vector.extract %407[0, 0, 0] : f32 from vector<1x1x1xf32>
    %409 = vector.broadcast %408 : f32 to vector<1x1xf32>
    %cst_174 = arith.constant 1.000000e+00 : f32
    %410 = vector.broadcast %cst_174 : f32 to vector<1x1xf32>
    %411 = arith.maximumf %409, %410 : vector<1x1xf32>
    %412 = arith.divf %404, %411 : vector<1x1xf32>
    %c0_175 = arith.constant 0 : index
    %c0_176 = arith.constant 0 : index
    %413 = vector.load %arg21[%c0_175, %c0_176] : memref<1x1xf32, #tpu.memory_space<vmem>>, vector<1x1xf32>
    tpu.vector_store %arg21[%c0_175, %c0_176], %412 {strides = array<i32>} : memref<1x1xf32, #tpu.memory_space<vmem>>, vector<1x1xf32>,
    return
  }
}

</mosaic_0001>

<bundles_post_ra>
// kernel: ner_forward.1
= control target key start
LH: loop header
LB: loop body
LE: loop exit
PB: predicated region body
PF: predicated region fallthrough
CT: control target
= control target key end

     0   :  { %s3514_s0 = inlined_call_operand.vmem [shape: f32[16,32], index: 0, kind: input, shape index: {}]   ;;  %s3515_s1 = inlined_call_operand.vmem [shape: f32[2,8], index: 1, kind: input, shape index: {}]   ;;  %s3516_s2 = inlined_call_operand.vmem [shape: f32[1,32], index: 2, kind: input, shape index: {}]   ;;  %s3517_s3 = inlined_call_operand.vmem [shape: f32[1,32], index: 3, kind: input, shape index: {}]   ;;  %s3518_s4 = inlined_call_operand.vmem [shape: bf16[2,32,96], index: 4, kind: input, shape index: {}]   ;;  %s3519_s5 = inlined_call_operand.vmem [shape: f32[2,1,96], index: 5, kind: input, shape index: {}]   ;;  %s3520_s6 = inlined_call_operand.vmem [shape: bf16[2,32,32], index: 6, kind: input, shape index: {}]   ;;  %s3521_s7 = inlined_call_operand.vmem [shape: f32[2,1,32], index: 7, kind: input, shape index: {}]   ;;  %s3522_s8 = inlined_call_operand.vmem [shape: f32[2,1,32], index: 8, kind: input, shape index: {}]   ;;  %s3523_s9 = inlined_call_operand.vmem [shape: f32[2,1,32], index: 9, kind: input, shape index: {}]   ;;  %s3524_s10 = inlined_call_operand.vmem [shape: bf16[2,32,64], index: 10, kind: input, shape index: {}]   ;;  %s3525_s11 = inlined_call_operand.vmem [shape: f32[2,1,64], index: 11, kind: input, shape index: {}]   ;;  %s3526_s12 = inlined_call_operand.vmem [shape: bf16[2,64,32], index: 12, kind: input, shape index: {}]   ;;  %s3527_s13 = inlined_call_operand.vmem [shape: f32[2,1,32], index: 13, kind: input, shape index: {}]   ;;  %s3528_s14 = inlined_call_operand.vmem [shape: f32[2,1,32], index: 14, kind: input, shape index: {}]   ;;  %s3529_s15 = inlined_call_operand.vmem [shape: f32[2,1,32], index: 15, kind: input, shape index: {}]   ;;  %s3530_s16 = inlined_call_operand.vmem [shape: bf16[32,5], index: 16, kind: input, shape index: {}]   ;;  %s3531_s17 = inlined_call_operand.vmem [shape: f32[1,5], index: 17, kind: input, shape index: {}]   ;;  %s3532_s18 = inlined_call_operand.vmem [shape: s32[16,1], index: 18, kind: input, shape index: {}]   ;;  %s3533_s19 = inlined_call_operand.hbm [shape: f32[16,32], index: 19, kind: output, shape index: {0}]   ;;  %s3534_s20 = inlined_call_operand.vmem [shape: f32[16,5], index: 20, kind: output, shape index: {1}]   ;;  %s3535_s21 = inlined_call_operand.hbm [shape: f32[1,1], index: 21, kind: output, shape index: {2}]  }
   0x1   :  { %3539 = sst [smem:[#allocation8_spill]] %s3514_s0 }
   0x2   :  { %3540 = sst [smem:[#allocation9_spill]] %s3515_s1 }
   0x3   :  { %3541 = sst [smem:[#allocation10_spill]] %s3516_s2 }
   0x4   :  { %3542 = sst [smem:[#allocation11_spill]] %s3517_s3 }
   0x5   :  { %3543 = sst [smem:[#allocation12_spill]] %s3518_s4 }
   0x6   :  { %3544 = sst [smem:[#allocation13_spill]] %s3519_s5 }
   0x7   :  { %27 = vsyncpa [#allocation3], 0  ;;  %s3545_s26 = sld [smem:[#allocation8_spill]]  ;;  %vm73_vm0 = vcmask 261120  }
   0xd   :  { %v69_v0 = vld [vmem:[%s3545_s26] sm:$0xff]  ;;  %v70_v1 = vld [vmem:[%s3545_s26 + $0x8] sm:$0xff] }
   0xe   :  { %v74_v2 = vsel %vm73_vm0, %v69_v0, 0.0  ;;  %v77_v3 = vsel %vm73_vm0, %v70_v1, 0.0 }
   0xf   :  { %75 = vadd.xlane.f32.xlu0 %v74_v2 }
  0x13   :  { %78 = vadd.xlane.f32.xlu0 %v77_v3 }
  0x14   :  { %28 = vsyncpa [#allocation5], 0  ;;  %s3546_s0 = sld [smem:[#allocation12_spill]]  ;;  %v2979_v15 = vmov 0.0   ;;  %vm2980_vm1 = vmmov 0   ;;  %s2981_s3 = smov 96   ;;  %v264_v42 = vlaneseq }
  0x15   :  { %2654 = vmatprep.subr.bf16.mxu0 %v2979_v15  ;;  %2658 = vmatprep.mubr.msk.bf16.mxu0 %vm2980_vm1, %v2979_v15  ;;  %s3547_s23 = sld [smem:[#allocation10_spill]]  ;;  %s2982_s28 = smov 80   ;;  %vm188_vm2 = vcmask 130048   ;;  %vm269_vm3 = vcmask 64512   ;;  %vm1111_vm4 = vcmask 523264   ;;  %vm2358_vm5 = vcmask 39936  }
  0x16   :  { %2662 = vmatprep.subr.mxu1 %v2979_v15  ;;  %2664 = vmatprep.mubr.msk.f32.mxu1 %vm2980_vm1, %v2979_v15  ;;  %s3548_s2 = sld [smem:[#allocation11_spill]]  ;;  %s2983_s29 = smov 112   ;;  %v265_v43 = vshrl.u32 %v264_v42, 7  ;;  %vm2419_vm10 = vcmask 7168  }
  0x17   :  { %s3549_s27 = sld [smem:[#allocation13_spill]]  ;;  %s2984_s22 = smov 64  }
  0x18   :  { %v266_v44 = vsub.s32 0, %v265_v43  ;;  %s3550_s5 = sld [smem:[#allocation9_spill]]  ;;  %s2986_s26 = smov 16  }
  0x1a   :  { %v2843_v14 = vld [vmem:[%s3546_s0 + $0x8] sm:$0xff]   ;;  %v2844_v16 = vld [vmem:[%s3546_s0] sm:$0xff]  }
  0x1b   :  { %2655 = vmatpush3.bf16.msra.mxu0 %v2843_v14  ;;  %v2485_v25 = vld [vmem:[%s3547_s23] ss:$0 sm:$0xff]  ;;  %s2985_s23 = smov 48  }
  0x1c   :  { %2656 = vmatprep.subr.bf16.mxu0 %v2979_v15  ;;  %v2486_v29 = vld [vmem:[%s3548_s2] ss:$0 sm:$0xff] }
  0x1d   :  { %v2487_v34 = vld [vmem:[%s3549_s27] ss:$0 sm:$0xff] }
  0x1e   :  { %v68_v45 = vld [vmem:[%s3550_s5] sm:$0x3] }
  0x1f   :  { %2657 = vmatpush3.bf16.msra.mxu0 %v2844_v16  ;;  %v3166_v46 = vrot.slane %v68_v45, %v266_v44 }
  0x20   :  { %2677 = vmatprep.subr.mxu0 %v2979_v15 }
  0x98   :  { %v76_v4 = vpop.xlane.xlu0 %75 }
  0x99   :  { %v81_v5 = vmul.f32 0.03125, %v76_v4  ;;  %v609_v4 = vsub.s32 1, %v265_v43 }
  0x9b   :  { %v83_v6 = vsub.f32 %v69_v0, %v81_v5 }
  0x9c   :  { %v79_v7 = vpop.xlane.xlu0 %78 }
  0x9d   :  { %v82_v8 = vmul.f32 0.03125, %v79_v7  ;;  %v85_v9 = vmul.f32 %v83_v6, %v83_v6 }
  0x9f   :  { %v84_v10 = vsub.f32 %v70_v1, %v82_v8  ;;  %v87_v11 = vsel %vm73_vm0, %v85_v9, 0.0  ;;  %v3200_v9 = vrot.slane %v68_v45, %v609_v4 }
  0xa0   :  { %88 = vadd.xlane.f32.xlu1 %v87_v11 }
  0xa1   :  { %v86_v12 = vmul.f32 %v84_v10, %v84_v10 }
  0xa3   :  { %v90_v13 = vsel %vm73_vm0, %v86_v12, 0.0 }
  0xa4   :  { %91 = vadd.xlane.f32.xlu1 %v90_v13 }
 0x129   :  { %v89_v17 = vpop.xlane.xlu1 %88 }
 0x12a   :  { %v93_v18 = vmul.f32 0.03125, %v89_v17 }
 0x12c   :  { %v95_v19 = vadd.f32 1e-12, %v93_v18 }
 0x12d   :  { %v92_v20 = vpop.xlane.xlu1 %91 }
 0x12e   :  { %2865 = vrsqrt.f32 %v95_v19  ;;  %v94_v21 = vmul.f32 0.03125, %v92_v20 }
 0x130   :  { %v96_v22 = vadd.f32 1e-12, %v94_v21 }
 0x132   :  { %2867 = vrsqrt.f32 %v96_v22 }
 0x13b   :  { %v2866_v23 = vpop.eup %2865 }
 0x13c   :  { %v99_v24 = vmul.f32 %v2866_v23, %v83_v6 }
 0x13e   :  { %v107_v28 = vmul.f32 %v2485_v25, %v99_v24 }
 0x13f   :  { %v2868_v26 = vpop.eup %2867 }
 0x140   :  { %v100_v27 = vmul.f32 %v2868_v26, %v84_v10  ;;  %v3132_v31 = vadd.f32 %v2486_v29, %v107_v28 }
 0x142   :  { %v108_v30 = vmul.f32 %v2485_v25, %v100_v27 }
 0x144   :  { %v3134_v32 = vadd.f32 %v2486_v29, %v108_v30 }
 0x146   :  { %v121_v33 = vpack.c.bf16 %v3134_v32, %v3132_v31 }
 0x148   :  { %2659 = vmatmul.mubr.msk.bf16.vlgmr.msra.gmra.mxu0 %vm73_vm0, %v121_v33 }
 0x149   :  { %2679 = vmatprep.mubr.msk.f32.mxu0 %vm2980_vm1, %v2979_v15 }
 0x208   :  { %v178_v35 = vpop.f32.mrf.mxu0 }
 0x209   :  { %v3144_v36 = vadd.f32 %v2487_v34, %v178_v35 }
 0x20a   :  { %v2660_v37 = vpop.f32.mrf.mxu0 }
 0x20b   :  { %186 = vrot.lane.b32.xlu0 %v3144_v36, %s2981_s3 }
 0x20c   :  { %v181_v38 = vpop.f32.mrf.mxu0 }
 0x20d   :  { %v3150_v40 = vadd.f32 %v2487_v34, %v181_v38 }
 0x20e   :  { %v2661_v39 = vpop.f32.mrf.mxu0 }
 0x20f   :  { %359 = vrot.lane.b32.xlu0 %v3144_v36, %s2982_s28 }
 0x213   :  { %530 = vrot.lane.b32.xlu0 %v3150_v40, %s2981_s3 }
 0x217   :  { %699 = vrot.lane.b32.xlu0 %v3150_v40, %s2983_s29 }
 0x27d   :  { %v187_v41 = vpop.permute.xlu0 %186 }
 0x27e   :  { %2663 = vmatpush3.xpose.msk.msra.mxu1 %vm188_vm2, %v187_v41 }
 0x27f   :  { %2667 = vmatprep.subr.mxu1 %v2979_v15 }
 0x281   :  { %2665 = vmatmul.mubr.msk.f32.vlgmr.msra.gmra.mxu1 %vm188_vm2, %v3144_v36  ;;  %v360_v60 = vpop.permute.xlu0 %359 }
 0x282   :  { %2669 = vmatprep.mubr.msk.f32.mxu1 %vm2980_vm1, %v2979_v15 }
 0x285   :  { %v531_v63 = vpop.permute.xlu0 %530 }
 0x289   :  { %v700_v1 = vpop.permute.xlu0 %699 }
 0x341   :  { %v259_v47 = vpop.f32.mrf.mxu1 }
 0x342   :  { %v263_v48 = vmul.f32 0.25, %v259_v47 }
 0x343   :  { %v2666_v49 = vpop.f32.mrf.mxu1 }
 0x344   :  { %v268_v50 = vadd.f32 %v3166_v46, %v263_v48 }
 0x346   :  { %v270_v51 = vsel %vm269_vm3, %v268_v50, -inf }
 0x347   :  { %271 = vmax.xlane.f32.xlu1 %v270_v51 }
 0x358   :  { %281 = vrot.lane.b32.xlu1 %v3144_v36, %s2984_s22 }
 0x3d0   :  { %v272_v52 = vpop.xlane.xlu1 %271 }
 0x3d1   :  { %v273_v53 = vsub.f32 %v268_v50, %v272_v52 }
 0x3d3   :  { %v274_v54 = vmul.f32 1.442695, %v273_v53  ;;  %v2845_v53 = vld [vmem:[%s3520_s6 + $0x8] sm:$0xff]  }
 0x3d4   :  { %v282_v55 = vpop.permute.xlu1 %281 }
 0x3d5   :  { %2869 = vpow2.f32 %v274_v54  ;;  %2668 = vmatpush3.msra.mxu1 %v282_v55  ;;  %v2846_v54 = vld [vmem:[%s3520_s6] sm:$0xff]  }
 0x3d6   :  { %2672 = vmatprep.subr.mxu1 %v2979_v15 }
 0x3e2   :  { %v2870_v56 = vpop.eup %2869 }
 0x3e3   :  { %v276_v57 = vsel %vm269_vm3, %v2870_v56, 0.0 }
 0x3e4   :  { %277 = vadd.xlane.f32.xlu1 %v276_v57 }
 0x3f5   :  { %357 = vrot.lane.b32.xlu1 %v3144_v36, %s2983_s29 }
 0x3f9   :  { %701 = vrot.lane.b32.xlu1 %v3150_v40, %s2982_s28 }
 0x46d   :  { %v278_v58 = vpop.xlane.xlu1 %277 }
 0x46e   :  { %2871 = vrcp.f32 %v278_v58 }
 0x471   :  { %v358_v62 = vpop.permute.xlu1 %357 }
 0x475   :  { %v702_v0 = vpop.permute.xlu1 %701 }
 0x47b   :  { %v2872_v59 = vpop.eup %2871 }
 0x47c   :  { %v280_v61 = vmul.f32 %v2872_v59, %v2870_v56 }
 0x47e   :  { %2670 = vmatmul.mubr.msk.f32.vlgmr.msra.gmra.mxu1 %vm269_vm3, %v280_v61 }
 0x47f   :  { %2673 = vmatpush3.xpose.msk.msra.mxu1 %vm188_vm2, %v360_v60  ;;  %2674 = vmatprep.mubr.msk.f32.mxu1 %vm2980_vm1, %v2979_v15 }
 0x480   :  { %2682 = vmatprep.subr.mxu1 %v2979_v15 }
 0x482   :  { %2675 = vmatmul.mubr.msk.f32.vlgmr.msra.gmra.mxu1 %vm188_vm2, %v358_v62 }
 0x483   :  { %2683 = vmatpush3.xpose.msk.msra.mxu1 %vm188_vm2, %v531_v63  ;;  %2684 = vmatprep.mubr.msk.f32.mxu1 %vm2980_vm1, %v2979_v15 }
 0x484   :  { %2692 = vmatprep.subr.mxu1 %v2979_v15 }
 0x486   :  { %2685 = vmatmul.mubr.msk.f32.vlgmr.msra.gmra.mxu1 %vm188_vm2, %v3150_v40 }
 0x487   :  { %2693 = vmatpush3.xpose.msk.msra.mxu1 %vm188_vm2, %v702_v0  ;;  %2694 = vmatprep.mubr.msk.f32.mxu1 %vm2980_vm1, %v2979_v15 }
 0x488   :  { %2702 = vmatprep.subr.bf16.mxu1 %v2979_v15 }
 0x48a   :  { %2695 = vmatmul.mubr.msk.f32.vlgmr.msra.gmra.mxu1 %vm188_vm2, %v700_v1 }
 0x48b   :  { %2706 = vmatprep.mubr.msk.bf16.mxu1 %vm2980_vm1, %v2979_v15  ;;  %2703 = vmatpush3.bf16.msra.mxu1 %v2845_v53 }
 0x48c   :  { %2704 = vmatprep.subr.bf16.mxu1 %v2979_v15 }
 0x48f   :  { %2705 = vmatpush3.bf16.msra.mxu1 %v2846_v54 }
 0x490   :  { %2718 = vmatprep.subr.bf16.mxu1 %v2979_v15 }
 0x53e   :  { %v3197_v2 = vpop.f32.mrf.mxu1 }
 0x540   :  { %v2671_v3 = vpop.f32.mrf.mxu1 }
 0x542   :  { %v431_v5 = vpop.f32.mrf.mxu1 }
 0x543   :  { %v435_v6 = vmul.f32 0.25, %v431_v5  ;;  %v2503_v5 = vld [vmem:[%s3521_s7] ss:$0 sm:$0xff] }
 0x544   :  { %v2676_v7 = vpop.f32.mrf.mxu1 }
 0x545   :  { %v436_v8 = vadd.f32 %v435_v6, %v3166_v46 }
 0x546   :  { %v602_v10 = vpop.f32.mrf.mxu1 }
 0x547   :  { %v606_v11 = vmul.f32 0.25, %v602_v10  ;;  %v437_v12 = vsel %vm269_vm3, %v436_v8, -inf }
 0x548   :  { %438 = vmax.xlane.f32.xlu1 %v437_v12  ;;  %v2686_v13 = vpop.f32.mrf.mxu1 }
 0x549   :  { %v611_v14 = vadd.f32 %v3200_v9, %v606_v11 }
 0x54a   :  { %v773_v16 = vpop.f32.mrf.mxu1 }
 0x54b   :  { %v777_v17 = vmul.f32 0.25, %v773_v16  ;;  %v612_v18 = vsel %vm269_vm3, %v611_v14, -inf }
 0x54c   :  { %613 = vmax.xlane.f32.xlu0 %v612_v18  ;;  %v2696_v19 = vpop.f32.mrf.mxu1 }
 0x54d   :  { %v778_v20 = vadd.f32 %v777_v17, %v3200_v9 }
 0x54f   :  { %v779_v21 = vsel %vm269_vm3, %v778_v20, -inf }
 0x550   :  { %780 = vmax.xlane.f32.xlu0 %v779_v21 }
 0x559   :  { %448 = vrot.lane.b32.xlu1 %v3144_v36, %s2985_s23 }
 0x5d1   :  { %v439_v22 = vpop.xlane.xlu1 %438 }
 0x5d2   :  { %v440_v23 = vsub.f32 %v436_v8, %v439_v22 }
 0x5d4   :  { %v441_v24 = vmul.f32 1.442695, %v440_v23 }
 0x5d5   :  { %v614_v25 = vpop.xlane.xlu0 %613  ;;  %v449_v26 = vpop.permute.xlu1 %448 }
 0x5d6   :  { %2873 = vpow2.f32 %v441_v24  ;;  %v615_v27 = vsub.f32 %v611_v14, %v614_v25  ;;  %2678 = vmatpush3.msra.mxu0 %v449_v26  ;;  %v2848_v26 = vld [vmem:[%s3524_s10] sm:$0xff]  }
 0x5d7   :  { %2687 = vmatprep.subr.mxu0 %v2979_v15 }
 0x5d8   :  { %v616_v28 = vmul.f32 1.442695, %v615_v27 }
 0x5d9   :  { %v781_v29 = vpop.xlane.xlu0 %780 }
 0x5da   :  { %2875 = vpow2.f32 %v616_v28  ;;  %v782_v30 = vsub.f32 %v778_v20, %v781_v29 }
 0x5dc   :  { %v783_v33 = vmul.f32 1.442695, %v782_v30 }
 0x5de   :  { %2877 = vpow2.f32 %v783_v33 }
 0x5e3   :  { %v2874_v34 = vpop.eup %2873 }
 0x5e4   :  { %v443_v35 = vsel %vm269_vm3, %v2874_v34, 0.0 }
 0x5e5   :  { %444 = vadd.xlane.f32.xlu0 %v443_v35 }
 0x5e7   :  { %v2876_v36 = vpop.eup %2875 }
 0x5e8   :  { %v618_v37 = vsel %vm269_vm3, %v2876_v36, 0.0 }
 0x5e9   :  { %619 = vadd.xlane.f32.xlu1 %v618_v37  ;;  %v2507_v37 = vld [vmem:[%s3522_s8] ss:$0 sm:$0xff] }
 0x5eb   :  { %v2878_v38 = vpop.eup %2877 }
 0x5ec   :  { %v785_v39 = vsel %vm269_vm3, %v2878_v38, 0.0 }
 0x5ed   :  { %786 = vadd.xlane.f32.xlu0 %v785_v39 }
 0x5fa   :  { %790 = vrot.lane.b32.xlu1 %v3150_v40, %s2985_s23 }
 0x603   :  { %623 = vrot.lane.b32.xlu0 %v3150_v40, %s2984_s22 }
 0x66e   :  { %v445_v41 = vpop.xlane.xlu0 %444 }
 0x66f   :  { %2879 = vrcp.f32 %v445_v41 }
 0x672   :  { %v620_v43 = vpop.xlane.xlu1 %619 }
 0x673   :  { %2881 = vrcp.f32 %v620_v43  ;;  %v2508_v43 = vld [vmem:[%s3523_s9] ss:$0 sm:$0xff] }
 0x676   :  { %v787_v44 = vpop.xlane.xlu0 %786  ;;  %v791_v40 = vpop.permute.xlu1 %790 }
 0x677   :  { %2883 = vrcp.f32 %v787_v44 }
 0x67a   :  { %v624_v48 = vpop.permute.xlu0 %623 }
 0x67c   :  { %v2880_v45 = vpop.eup %2879 }
 0x67d   :  { %v447_v47 = vmul.f32 %v2880_v45, %v2874_v34 }
 0x67f   :  { %2680 = vmatmul.mubr.msk.f32.vlgmr.msra.gmra.mxu0 %vm269_vm3, %v447_v47 }
 0x680   :  { %v2882_v49 = vpop.eup %2881  ;;  %2688 = vmatpush3.msra.mxu0 %v624_v48  ;;  %2689 = vmatprep.mubr.msk.f32.mxu0 %vm2980_vm1, %v2979_v15 }
 0x681   :  { %2697 = vmatprep.subr.mxu0 %v2979_v15  ;;  %v622_v50 = vmul.f32 %v2882_v49, %v2876_v36  ;;  %v2849_v49 = vld [vmem:[%s3526_s12 + $0x18] sm:$0xff]  }
 0x683   :  { %2690 = vmatmul.mubr.msk.f32.vlgmr.msra.gmra.mxu0 %vm269_vm3, %v622_v50  ;;  %v2850_v50 = vld [vmem:[%s3526_s12 + $0x10] sm:$0xff]  }
 0x684   :  { %v2884_v51 = vpop.eup %2883  ;;  %2698 = vmatpush3.msra.mxu0 %v791_v40  ;;  %2699 = vmatprep.mubr.msk.f32.mxu0 %vm2980_vm1, %v2979_v15  ;;  %v2851_v40 = vld [vmem:[%s3526_s12 + $0x8] sm:$0xff]  }
 0x685   :  { %v789_v52 = vmul.f32 %v2884_v51, %v2878_v38  ;;  %2710 = vmatprep.subr.bf16.mxu0 %v2979_v15  ;;  %v2852_v51 = vld [vmem:[%s3526_s12] sm:$0xff]  }
 0x687   :  { %2700 = vmatmul.mubr.msk.f32.vlgmr.msra.gmra.mxu0 %vm269_vm3, %v789_v52  ;;  %v2509_v52 = vld [vmem:[%s3525_s11] ss:$0 sm:$0xff] }
 0x688   :  { %2714 = vmatprep.mubr.msk.bf16.mxu0 %vm2980_vm1, %v2979_v15 }
 0x73f   :  { %v520_v55 = vpop.f32.mrf.mxu0 }
 0x741   :  { %v2681_v56 = vpop.f32.mrf.mxu0 }
 0x743   :  { %v695_v57 = vpop.f32.mrf.mxu0 }
 0x745   :  { %v2691_v58 = vpop.f32.mrf.mxu0 }
 0x747   :  { %v862_v59 = vpop.f32.mrf.mxu0 }
 0x748   :  { %v2831_v60 = vpack.i.bf16 %v862_v59, %v520_v55 }
 0x749   :  { %v2701_v61 = vpop.f32.mrf.mxu0 }
 0x74a   :  { %2832 = vrot.lane.b32.xlu1 %v2831_v60, %s2986_s26 }
 0x7bc   :  { %v2833_v62 = vpop.permute.xlu1 %2832 }
 0x7bd   :  { %v2835_v63 = vunpack.i.h.bf16 %v2833_v62  ;;  %v2834_v0 = vunpack.i.l.bf16 %v2833_v62 }
 0x7bf   :  { %v870_v1 = vsel %vm188_vm2, %v695_v57, %v2835_v63  ;;  %v528_v3 = vsel %vm188_vm2, %v3197_v2, %v2834_v0 }
 0x7c0   :  { %v875_v4 = vpack.c.bf16 %v870_v1, %v528_v3 }
 0x7c2   :  { %2707 = vmatmul.mubr.msk.bf16.vlgmr.msra.gmra.mxu1 %vm73_vm0, %v875_v4 }
 0x7c3   :  { %2726 = vmatprep.mubr.msk.bf16.mxu1 %vm2980_vm1, %v2979_v15  ;;  %2719 = vmatpush3.bf16.msra.mxu1 %v2849_v49 }
 0x7c4   :  { %2720 = vmatprep.subr.bf16.mxu1 %v2979_v15 }
 0x7c7   :  { %2721 = vmatpush3.bf16.msra.mxu1 %v2850_v50  ;;  %v2519_v50 = vld [vmem:[%s3528_s14] ss:$0 sm:$0xff] }
 0x7c8   :  { %2722 = vmatprep.subr.bf16.mxu1 %v2979_v15 }
 0x7cb   :  { %2723 = vmatpush3.bf16.msra.mxu1 %v2851_v40 }
 0x7cc   :  { %2724 = vmatprep.subr.bf16.mxu1 %v2979_v15 }
 0x7cf   :  { %2725 = vmatpush3.bf16.msra.mxu1 %v2852_v51 }
 0x7d0   :  { %2748 = vmatprep.subr.mxu1 %v2979_v15 }
 0x882   :  { %v932_v6 = vpop.f32.mrf.mxu1 }
 0x883   :  { %v933_v7 = vadd.f32 %v2503_v5, %v932_v6 }
 0x884   :  { %v2708_v8 = vpop.f32.mrf.mxu1 }
 0x885   :  { %v939_v10 = vadd.f32 %v933_v7, %v3132_v31 }
 0x886   :  { %v935_v11 = vpop.f32.mrf.mxu1 }
 0x887   :  { %v936_v12 = vadd.f32 %v2503_v5, %v935_v11  ;;  %v943_v13 = vsel %vm73_vm0, %v939_v10, 0.0 }
 0x888   :  { %944 = vadd.xlane.f32.xlu1 %v943_v13  ;;  %v2709_v2 = vpop.f32.mrf.mxu1 }
 0x889   :  { %v940_v14 = vadd.f32 %v936_v12, %v3134_v32  ;;  %v2847_v32 = vld [vmem:[%s3524_s10 + $0x8] sm:$0xff]  }
 0x88a   :  { %2711 = vmatpush3.bf16.msra.mxu0 %v2847_v32 }
 0x88b   :  { %v946_v16 = vsel %vm73_vm0, %v940_v14, 0.0  ;;  %2712 = vmatprep.subr.bf16.mxu0 %v2979_v15 }
 0x88c   :  { %947 = vadd.xlane.f32.xlu0 %v946_v16  ;;  %v2513_v16 = vld [vmem:[%s3527_s13] ss:$0 sm:$0xff] }
 0x88e   :  { %2713 = vmatpush3.bf16.msra.mxu0 %v2848_v26 }
 0x88f   :  { %2730 = vmatprep.subr.bf16.mxu0 %v2979_v15 }
 0x911   :  { %v945_v17 = vpop.xlane.xlu1 %944 }
 0x912   :  { %v949_v18 = vmul.f32 0.03125, %v945_v17 }
 0x914   :  { %v951_v19 = vsub.f32 %v939_v10, %v949_v18 }
 0x915   :  { %v948_v20 = vpop.xlane.xlu0 %947 }
 0x916   :  { %v950_v21 = vmul.f32 0.03125, %v948_v20  ;;  %v953_v22 = vmul.f32 %v951_v19, %v951_v19 }
 0x918   :  { %v952_v23 = vsub.f32 %v940_v14, %v950_v21  ;;  %v955_v31 = vsel %vm73_vm0, %v953_v22, 0.0 }
 0x919   :  { %956 = vadd.xlane.f32.xlu0 %v955_v31 }
 0x91a   :  { %v954_v24 = vmul.f32 %v952_v23, %v952_v23 }
 0x91c   :  { %v958_v25 = vsel %vm73_vm0, %v954_v24, 0.0 }
 0x91d   :  { %959 = vadd.xlane.f32.xlu0 %v958_v25 }
 0x9a2   :  { %v957_v27 = vpop.xlane.xlu0 %956 }
 0x9a3   :  { %v961_v28 = vmul.f32 0.03125, %v957_v27 }
 0x9a5   :  { %v963_v29 = vadd.f32 1e-12, %v961_v28 }
 0x9a6   :  { %v960_v30 = vpop.xlane.xlu0 %959 }
 0x9a7   :  { %2885 = vrsqrt.f32 %v963_v29  ;;  %v962_v33 = vmul.f32 0.03125, %v960_v30 }
 0x9a9   :  { %v964_v34 = vadd.f32 1e-12, %v962_v33 }
 0x9ab   :  { %2887 = vrsqrt.f32 %v964_v34 }
 0x9b4   :  { %v2886_v35 = vpop.eup %2885 }
 0x9b5   :  { %v967_v36 = vmul.f32 %v2886_v35, %v951_v19 }
 0x9b7   :  { %v975_v41 = vmul.f32 %v2507_v37, %v967_v36 }
 0x9b8   :  { %v2888_v38 = vpop.eup %2887 }
 0x9b9   :  { %v968_v39 = vmul.f32 %v2888_v38, %v952_v23  ;;  %v983_v45 = vadd.f32 %v2508_v43, %v975_v41  ;;  %v2854_v38 = vld [vmem:[%s3546_s0 + $0x10] sm:$0xff]  }
 0x9bb   :  { %v976_v44 = vmul.f32 %v2507_v37, %v968_v39  ;;  %v2853_v37 = vld [vmem:[%s3546_s0 + $0x18] sm:$0xff]  }
 0x9bd   :  { %v984_v47 = vadd.f32 %v2508_v43, %v976_v44 }
 0x9bf   :  { %v989_v48 = vpack.c.bf16 %v984_v47, %v983_v45 }
 0x9c1   :  { %2715 = vmatmul.mubr.msk.bf16.vlgmr.msra.gmra.mxu0 %vm73_vm0, %v989_v48 }
 0x9c2   :  { %2734 = vmatprep.mubr.msk.bf16.mxu0 %vm2980_vm1, %v2979_v15  ;;  %2731 = vmatpush3.bf16.msra.mxu0 %v2853_v37 }
 0x9c3   :  { %2732 = vmatprep.subr.bf16.mxu0 %v2979_v15 }
 0x9c6   :  { %2733 = vmatpush3.bf16.msra.mxu0 %v2854_v38 }
 0x9c7   :  { %2738 = vmatprep.subr.mxu0 %v2979_v15 }
 0xa81   :  { %v1046_v53 = vpop.f32.mrf.mxu0 }
 0xa82   :  { %v1047_v54 = vadd.f32 %v2509_v52, %v1046_v53  ;;  %v2520_v53 = vld [vmem:[%s3529_s15] ss:$0 sm:$0xff] }
 0xa83   :  { %v2716_v55 = vpop.f32.mrf.mxu0 }
 0xa84   :  { %v1053_v56 = vmul.f32 %v1047_v54, %v1047_v54 }
 0xa85   :  { %v1049_v57 = vpop.f32.mrf.mxu0 }
 0xa86   :  { %v1055_v58 = vmul.f32 %v1053_v56, %v1047_v54  ;;  %v1050_v59 = vadd.f32 %v2509_v52, %v1049_v57 }
 0xa87   :  { %v2717_v60 = vpop.f32.mrf.mxu0 }
 0xa88   :  { %v1057_v61 = vmul.f32 0.044715, %v1055_v58  ;;  %v1054_v62 = vmul.f32 %v1050_v59, %v1050_v59  ;;  %v2526_v58 = vld [vmem:[%s3549_s27 + $0x1] ss:$0 sm:$0xff] }
 0xa8a   :  { %v1059_v63 = vadd.f32 %v1057_v61, %v1047_v54  ;;  %v1056_v0 = vmul.f32 %v1054_v62, %v1050_v59 }
 0xa8c   :  { %v1061_v1 = vmul.f32 0.7978846, %v1059_v63  ;;  %v1058_v3 = vmul.f32 0.044715, %v1056_v0 }
 0xa8e   :  { %2889 = vtanh.f32 %v1061_v1  ;;  %v1060_v4 = vadd.f32 %v1058_v3, %v1050_v59 }
 0xa90   :  { %v1062_v5 = vmul.f32 0.7978846, %v1060_v4 }
 0xa92   :  { %2891 = vtanh.f32 %v1062_v5 }
 0xa9b   :  { %v2890_v6 = vpop.eup %2889 }
 0xa9c   :  { %v1065_v7 = vadd.f32 1.0, %v2890_v6 }
 0xa9e   :  { %v1067_v10 = vmul.f32 0.5, %v1065_v7 }
 0xa9f   :  { %v2892_v8 = vpop.eup %2891 }
 0xaa0   :  { %v1066_v11 = vadd.f32 1.0, %v2892_v8  ;;  %v1069_v13 = vmul.f32 %v1067_v10, %v1047_v54 }
 0xaa2   :  { %v1068_v12 = vmul.f32 0.5, %v1066_v11 }
 0xaa4   :  { %v1070_v2 = vmul.f32 %v1068_v12, %v1050_v59 }
 0xaa6   :  { %v1079_v14 = vpack.c.bf16 %v1070_v2, %v1069_v13 }
 0xaa8   :  { %2727 = vmatmul.mubr.msk.bf16.vlgmr.msra.gmra.mxu1 %vm1111_vm4, %v1079_v14 }
 0xaa9   :  { %2750 = vmatprep.mubr.msk.f32.mxu1 %vm2980_vm1, %v2979_v15 }
 0xb68   :  { %v1149_v17 = vpop.f32.mrf.mxu1 }
 0xb69   :  { %v1150_v18 = vadd.f32 %v2513_v16, %v1149_v17 }
 0xb6a   :  { %v2728_v19 = vpop.f32.mrf.mxu1 }
 0xb6b   :  { %v1156_v20 = vadd.f32 %v1150_v18, %v983_v45 }
 0xb6c   :  { %v1152_v21 = vpop.f32.mrf.mxu1 }
 0xb6d   :  { %v1153_v22 = vadd.f32 %v2513_v16, %v1152_v21  ;;  %v1160_v23 = vsel %vm73_vm0, %v1156_v20, 0.0 }
 0xb6e   :  { %1161 = vadd.xlane.f32.xlu1 %v1160_v23  ;;  %v2729_v31 = vpop.f32.mrf.mxu1 }
 0xb6f   :  { %v1157_v24 = vadd.f32 %v1153_v22, %v984_v47 }
 0xb71   :  { %v1163_v25 = vsel %vm73_vm0, %v1157_v24, 0.0 }
 0xb72   :  { %1164 = vadd.xlane.f32.xlu0 %v1163_v25 }
 0xbf7   :  { %v1162_v32 = vpop.xlane.xlu1 %1161 }
 0xbf8   :  { %v1166_v26 = vmul.f32 0.03125, %v1162_v32 }
 0xbfa   :  { %v1168_v27 = vsub.f32 %v1156_v20, %v1166_v26 }
 0xbfb   :  { %v1165_v28 = vpop.xlane.xlu0 %1164 }
 0xbfc   :  { %v1167_v29 = vmul.f32 0.03125, %v1165_v28  ;;  %v1170_v30 = vmul.f32 %v1168_v27, %v1168_v27 }
 0xbfe   :  { %v1169_v33 = vsub.f32 %v1157_v24, %v1167_v29  ;;  %v1172_v34 = vsel %vm73_vm0, %v1170_v30, 0.0 }
 0xbff   :  { %1173 = vadd.xlane.f32.xlu1 %v1172_v34 }
 0xc00   :  { %v1171_v35 = vmul.f32 %v1169_v33, %v1169_v33 }
 0xc02   :  { %v1175_v36 = vsel %vm73_vm0, %v1171_v35, 0.0 }
 0xc03   :  { %1176 = vadd.xlane.f32.xlu0 %v1175_v36 }
 0xc88   :  { %v1174_v39 = vpop.xlane.xlu1 %1173 }
 0xc89   :  { %v1178_v41 = vmul.f32 0.03125, %v1174_v39 }
 0xc8b   :  { %v1180_v43 = vadd.f32 1e-12, %v1178_v41 }
 0xc8c   :  { %v1177_v44 = vpop.xlane.xlu0 %1176 }
 0xc8d   :  { %2893 = vrsqrt.f32 %v1180_v43  ;;  %v1179_v45 = vmul.f32 0.03125, %v1177_v44 }
 0xc8f   :  { %v1181_v47 = vadd.f32 1e-12, %v1179_v45 }
 0xc91   :  { %2895 = vrsqrt.f32 %v1181_v47 }
 0xc9a   :  { %v2894_v48 = vpop.eup %2893 }
 0xc9b   :  { %v1184_v49 = vmul.f32 %v2894_v48, %v1168_v27 }
 0xc9d   :  { %v1192_v52 = vmul.f32 %v2519_v50, %v1184_v49 }
 0xc9e   :  { %v2896_v40 = vpop.eup %2895 }
 0xc9f   :  { %v1185_v51 = vmul.f32 %v2896_v40, %v1169_v33  ;;  %v3312_v55 = vadd.f32 %v2520_v53, %v1192_v52 }
 0xca1   :  { %v1193_v54 = vmul.f32 %v2519_v50, %v1185_v51 }
 0xca3   :  { %v3314_v56 = vadd.f32 %v2520_v53, %v1193_v54 }
 0xca5   :  { %v1207_v57 = vpack.c.bf16 %v3314_v56, %v3312_v55 }
 0xca7   :  { %2735 = vmatmul.mubr.msk.bf16.vlgmr.msra.gmra.mxu0 %vm73_vm0, %v1207_v57 }
 0xca8   :  { %2740 = vmatprep.mubr.msk.f32.mxu0 %vm2980_vm1, %v2979_v15 }
 0xd67   :  { %v1265_v59 = vpop.f32.mrf.mxu0 }
 0xd68   :  { %v3324_v60 = vadd.f32 %v2526_v58, %v1265_v59 }
 0xd69   :  { %v2736_v61 = vpop.f32.mrf.mxu0 }
 0xd6a   :  { %1440 = vrot.lane.b32.xlu0 %v3324_v60, %s2982_s28  ;;  %1273 = vrot.lane.b32.xlu1 %v3324_v60, %s2981_s3 }
 0xd6b   :  { %v1268_v62 = vpop.f32.mrf.mxu0 }
 0xd6c   :  { %v3330_v63 = vadd.f32 %v2526_v58, %v1268_v62 }
 0xd6d   :  { %v2737_v0 = vpop.f32.mrf.mxu0 }
 0xd6e   :  { %1438 = vrot.lane.b32.xlu1 %v3324_v60, %s2983_s29  ;;  %1776 = vrot.lane.b32.xlu0 %v3330_v63, %s2983_s29 }
 0xd72   :  { %1611 = vrot.lane.b32.xlu1 %v3330_v63, %s2981_s3 }
 0xd76   :  { %1778 = vrot.lane.b32.xlu1 %v3330_v63, %s2982_s28 }
 0xddc   :  { %v1441_v1 = vpop.permute.xlu0 %1440  ;;  %v1274_v3 = vpop.permute.xlu1 %1273 }
 0xddd   :  { %2739 = vmatpush3.xpose.msk.msra.mxu0 %vm188_vm2, %v1274_v3  ;;  %2749 = vmatpush3.xpose.msk.msra.mxu1 %vm188_vm2, %v1441_v1 }
 0xdde   :  { %2758 = vmatprep.subr.mxu1 %v2979_v15  ;;  %2743 = vmatprep.subr.mxu0 %v2979_v15 }
 0xde0   :  { %2741 = vmatmul.mubr.msk.f32.vlgmr.msra.gmra.mxu0 %vm188_vm2, %v3324_v60  ;;  %v1439_v4 = vpop.permute.xlu1 %1438  ;;  %v1777_v7 = vpop.permute.xlu0 %1776 }
 0xde1   :  { %2751 = vmatmul.mubr.msk.f32.vlgmr.msra.gmra.mxu1 %vm188_vm2, %v1439_v4  ;;  %2745 = vmatprep.mubr.msk.f32.mxu0 %vm2980_vm1, %v2979_v15  ;;  %v2855_v4 = vld [vmem:[%s3520_s6 + $0x18] sm:$0xff]  }
 0xde2   :  { %2760 = vmatprep.mubr.msk.f32.mxu1 %vm2980_vm1, %v2979_v15 }
 0xde4   :  { %v1612_v5 = vpop.permute.xlu1 %1611 }
 0xde5   :  { %2759 = vmatpush3.xpose.msk.msra.mxu1 %vm188_vm2, %v1612_v5 }
 0xde6   :  { %2768 = vmatprep.subr.mxu1 %v2979_v15 }
 0xde8   :  { %2761 = vmatmul.mubr.msk.f32.vlgmr.msra.gmra.mxu1 %vm188_vm2, %v3330_v63  ;;  %v1779_v6 = vpop.permute.xlu1 %1778 }
 0xde9   :  { %2769 = vmatpush3.xpose.msk.msra.mxu1 %vm188_vm2, %v1779_v6  ;;  %2770 = vmatprep.mubr.msk.f32.mxu1 %vm2980_vm1, %v2979_v15 }
 0xdea   :  { %2778 = vmatprep.subr.bf16.mxu1 %v2979_v15 }
 0xdec   :  { %2771 = vmatmul.mubr.msk.f32.vlgmr.msra.gmra.mxu1 %vm188_vm2, %v1777_v7  ;;  %v2856_v7 = vld [vmem:[%s3520_s6 + $0x10] sm:$0xff]  }
 0xded   :  { %2782 = vmatprep.mubr.msk.bf16.mxu1 %vm2980_vm1, %v2979_v15  ;;  %2779 = vmatpush3.bf16.msra.mxu1 %v2855_v4 }
 0xdee   :  { %2780 = vmatprep.subr.bf16.mxu1 %v2979_v15 }
 0xdf1   :  { %2781 = vmatpush3.bf16.msra.mxu1 %v2856_v7 }
 0xdf2   :  { %2794 = vmatprep.subr.bf16.mxu1 %v2979_v15 }
 0xea0   :  { %v1345_v8 = vpop.f32.mrf.mxu0 }
 0xea1   :  { %v1349_v10 = vmul.f32 0.25, %v1345_v8  ;;  %v1512_v11 = vpop.f32.mrf.mxu1 }
 0xea2   :  { %v1516_v12 = vmul.f32 0.25, %v1512_v11  ;;  %v2742_v13 = vpop.f32.mrf.mxu0 }
 0xea3   :  { %v2752_v2 = vpop.f32.mrf.mxu1  ;;  %v1350_v14 = vadd.f32 %v1349_v10, %v3166_v46 }
 0xea4   :  { %v1517_v16 = vadd.f32 %v1516_v12, %v3166_v46 }
 0xea5   :  { %v1351_v17 = vsel %vm269_vm3, %v1350_v14, -inf }
 0xea6   :  { %1352 = vmax.xlane.f32.xlu1 %v1351_v17  ;;  %v1518_v18 = vsel %vm269_vm3, %v1517_v16, -inf }
 0xea7   :  { %1519 = vmax.xlane.f32.xlu0 %v1518_v18 }
 0xea8   :  { %v1683_v19 = vpop.f32.mrf.mxu1 }
 0xea9   :  { %v1687_v20 = vmul.f32 0.25, %v1683_v19 }
 0xeaa   :  { %v2762_v21 = vpop.f32.mrf.mxu1 }
 0xeab   :  { %v1688_v22 = vadd.f32 %v1687_v20, %v3200_v9 }
 0xeac   :  { %v1850_v23 = vpop.f32.mrf.mxu1 }
 0xead   :  { %v1854_v31 = vmul.f32 0.25, %v1850_v23  ;;  %v1689_v24 = vsel %vm269_vm3, %v1688_v22, -inf }
 0xeae   :  { %1690 = vmax.xlane.f32.xlu0 %v1689_v24  ;;  %v2772_v25 = vpop.f32.mrf.mxu1 }
 0xeaf   :  { %v1855_v32 = vadd.f32 %v1854_v31, %v3200_v9 }
 0xeb1   :  { %v1856_v46 = vsel %vm269_vm3, %v1855_v32, -inf }
 0xeb2   :  { %1857 = vmax.xlane.f32.xlu0 %v1856_v46 }
 0xeb7   :  { %1362 = vrot.lane.b32.xlu1 %v3324_v60, %s2984_s22 }
 0xf2f   :  { %v1353_v26 = vpop.xlane.xlu1 %1352 }
 0xf30   :  { %v1354_v27 = vsub.f32 %v1350_v14, %v1353_v26  ;;  %v1520_v28 = vpop.xlane.xlu0 %1519 }
 0xf31   :  { %v1521_v29 = vsub.f32 %v1517_v16, %v1520_v28 }
 0xf32   :  { %v1355_v30 = vmul.f32 1.442695, %v1354_v27 }
 0xf33   :  { %v1522_v33 = vmul.f32 1.442695, %v1521_v29  ;;  %v1363_v34 = vpop.permute.xlu1 %1362 }
 0xf34   :  { %2897 = vpow2.f32 %v1355_v30  ;;  %2744 = vmatpush3.msra.mxu0 %v1363_v34 }
 0xf35   :  { %2899 = vpow2.f32 %v1522_v33  ;;  %2753 = vmatprep.subr.mxu0 %v2979_v15 }
 0xf37   :  { %v1691_v35 = vpop.xlane.xlu0 %1690 }
 0xf38   :  { %v1692_v9 = vsub.f32 %v1688_v22, %v1691_v35  ;;  %v2547_v22 = vld [vmem:[%s3521_s7 + $0x1] ss:$0 sm:$0xff] }
 0xf3a   :  { %v1693_v36 = vmul.f32 1.442695, %v1692_v9 }
 0xf3b   :  { %v1858_v37 = vpop.xlane.xlu0 %1857 }
 0xf3c   :  { %2901 = vpow2.f32 %v1693_v36  ;;  %v1859_v38 = vsub.f32 %v1855_v32, %v1858_v37 }
 0xf3e   :  { %v1860_v39 = vmul.f32 1.442695, %v1859_v38 }
 0xf40   :  { %2903 = vpow2.f32 %v1860_v39 }
 0xf41   :  { %v2898_v41 = vpop.eup %2897 }
 0xf42   :  { %v2900_v43 = vpop.eup %2899  ;;  %v1357_v44 = vsel %vm269_vm3, %v2898_v41, 0.0 }
 0xf43   :  { %1358 = vadd.xlane.f32.xlu1 %v1357_v44  ;;  %v1524_v45 = vsel %vm269_vm3, %v2900_v43, 0.0 }
 0xf44   :  { %1525 = vadd.xlane.f32.xlu0 %v1524_v45 }
 0xf49   :  { %v2902_v47 = vpop.eup %2901 }
 0xf4a   :  { %v1695_v48 = vsel %vm269_vm3, %v2902_v47, 0.0 }
 0xf4b   :  { %1696 = vadd.xlane.f32.xlu1 %v1695_v48 }
 0xf4d   :  { %v2904_v49 = vpop.eup %2903 }
 0xf4e   :  { %v1862_v50 = vsel %vm269_vm3, %v2904_v49, 0.0 }
 0xf4f   :  { %1863 = vadd.xlane.f32.xlu0 %v1862_v50 }
 0xf5c   :  { %1700 = vrot.lane.b32.xlu1 %v3330_v63, %s2984_s22 }
 0xf60   :  { %1867 = vrot.lane.b32.xlu1 %v3330_v63, %s2985_s23 }
 0xf65   :  { %1529 = vrot.lane.b32.xlu0 %v3324_v60, %s2985_s23 }
 0xfcc   :  { %v1359_v40 = vpop.xlane.xlu1 %1358 }
 0xfcd   :  { %2905 = vrcp.f32 %v1359_v40  ;;  %v1526_v51 = vpop.xlane.xlu0 %1525 }
 0xfce   :  { %2907 = vrcp.f32 %v1526_v51  ;;  %v2553_v51 = vld [vmem:[%s3522_s8 + $0x1] ss:$0 sm:$0xff] }
 0xfd4   :  { %v1697_v52 = vpop.xlane.xlu1 %1696 }
 0xfd5   :  { %2909 = vrcp.f32 %v1697_v52 }
 0xfd8   :  { %v1864_v53 = vpop.xlane.xlu0 %1863  ;;  %v1701_v61 = vpop.permute.xlu1 %1700 }
 0xfd9   :  { %2911 = vrcp.f32 %v1864_v53 }
 0xfda   :  { %v2906_v54 = vpop.eup %2905 }
 0xfdb   :  { %v1361_v57 = vmul.f32 %v2906_v54, %v2898_v41  ;;  %v2908_v58 = vpop.eup %2907  ;;  %v2858_v41 = vld [vmem:[%s3524_s10 + $0x10] sm:$0xff]  }
 0xfdc   :  { %v1530_v59 = vpop.permute.xlu0 %1529  ;;  %v1528_v60 = vmul.f32 %v2908_v58, %v2900_v43  ;;  %v1868_v0 = vpop.permute.xlu1 %1867 }
 0xfdd   :  { %2746 = vmatmul.mubr.msk.f32.vlgmr.msra.gmra.mxu0 %vm269_vm3, %v1361_v57  ;;  %v2554_v57 = vld [vmem:[%s3523_s9 + $0x1] ss:$0 sm:$0xff] }
 0xfde   :  { %2754 = vmatpush3.msra.mxu0 %v1530_v59  ;;  %2755 = vmatprep.mubr.msk.f32.mxu0 %vm2980_vm1, %v2979_v15 }
 0xfdf   :  { %2763 = vmatprep.subr.mxu0 %v2979_v15 }
 0xfe1   :  { %2756 = vmatmul.mubr.msk.f32.vlgmr.msra.gmra.mxu0 %vm269_vm3, %v1528_v60 }
 0xfe2   :  { %v2910_v62 = vpop.eup %2909  ;;  %2764 = vmatpush3.msra.mxu0 %v1701_v61  ;;  %2765 = vmatprep.mubr.msk.f32.mxu0 %vm2980_vm1, %v2979_v15 }
 0xfe3   :  { %2773 = vmatprep.subr.mxu0 %v2979_v15  ;;  %v1699_v63 = vmul.f32 %v2910_v62, %v2902_v47  ;;  %v2859_v62 = vld [vmem:[%s3526_s12 + $0x38] sm:$0xff]  }
 0xfe5   :  { %2766 = vmatmul.mubr.msk.f32.vlgmr.msra.gmra.mxu0 %vm269_vm3, %v1699_v63  ;;  %v2860_v63 = vld [vmem:[%s3526_s12 + $0x30] sm:$0xff]  }
 0xfe6   :  { %v2912_v1 = vpop.eup %2911  ;;  %2774 = vmatpush3.msra.mxu0 %v1868_v0  ;;  %2775 = vmatprep.mubr.msk.f32.mxu0 %vm2980_vm1, %v2979_v15  ;;  %v2861_v0 = vld [vmem:[%s3526_s12 + $0x28] sm:$0xff]  }
 0xfe7   :  { %v1866_v3 = vmul.f32 %v2912_v1, %v2904_v49  ;;  %2786 = vmatprep.subr.bf16.mxu0 %v2979_v15  ;;  %v2862_v1 = vld [vmem:[%s3526_s12 + $0x20] sm:$0xff]  }
 0xfe9   :  { %2776 = vmatmul.mubr.msk.f32.vlgmr.msra.gmra.mxu0 %vm269_vm3, %v1866_v3  ;;  %v2560_v3 = vld [vmem:[%s3525_s11 + $0x1] ss:$0 sm:$0xff] }
 0xfea   :  { %2790 = vmatprep.mubr.msk.bf16.mxu0 %vm2980_vm1, %v2979_v15 }
0x109d   :  { %v1434_v5 = vpop.f32.mrf.mxu0 }
0x109f   :  { %v2747_v6 = vpop.f32.mrf.mxu0 }
0x10a1   :  { %v1601_v8 = vpop.f32.mrf.mxu0 }
0x10a3   :  { %v2757_v10 = vpop.f32.mrf.mxu0 }
0x10a5   :  { %v1772_v11 = vpop.f32.mrf.mxu0 }
0x10a7   :  { %v2767_v12 = vpop.f32.mrf.mxu0 }
0x10a9   :  { %v1939_v13 = vpop.f32.mrf.mxu0 }
0x10aa   :  { %v2836_v2 = vpack.i.bf16 %v1939_v13, %v1601_v8 }
0x10ab   :  { %v2777_v14 = vpop.f32.mrf.mxu0 }
0x10ac   :  { %2837 = vrot.lane.b32.xlu1 %v2836_v2, %s2986_s26 }
0x111e   :  { %v2838_v16 = vpop.permute.xlu1 %2837 }
0x111f   :  { %v2840_v17 = vunpack.i.h.bf16 %v2838_v16  ;;  %v2839_v18 = vunpack.i.l.bf16 %v2838_v16 }
0x1121   :  { %v1947_v19 = vsel %vm188_vm2, %v1772_v11, %v2840_v17  ;;  %v1609_v20 = vsel %vm188_vm2, %v1434_v5, %v2839_v18 }
0x1122   :  { %v1953_v21 = vpack.c.bf16 %v1947_v19, %v1609_v20 }
0x1124   :  { %2783 = vmatmul.mubr.msk.bf16.vlgmr.msra.gmra.mxu1 %vm73_vm0, %v1953_v21 }
0x1125   :  { %2802 = vmatprep.mubr.msk.bf16.mxu1 %vm2980_vm1, %v2979_v15  ;;  %2795 = vmatpush3.bf16.msra.mxu1 %v2859_v62  ;;  %v2582_v62 = vld [vmem:[%s3529_s15 + $0x1] ss:$0 sm:$0xff] }
0x1126   :  { %2796 = vmatprep.subr.bf16.mxu1 %v2979_v15 }
0x1129   :  { %2797 = vmatpush3.bf16.msra.mxu1 %v2860_v63 }
0x112a   :  { %2798 = vmatprep.subr.bf16.mxu1 %v2979_v15 }
0x112d   :  { %2799 = vmatpush3.bf16.msra.mxu1 %v2861_v0 }
0x112e   :  { %2800 = vmatprep.subr.bf16.mxu1 %v2979_v15 }
0x1131   :  { %2801 = vmatpush3.bf16.msra.mxu1 %v2862_v1 }
0x11e4   :  { %v2011_v23 = vpop.f32.mrf.mxu1 }
0x11e5   :  { %v2012_v31 = vadd.f32 %v2547_v22, %v2011_v23 }
0x11e6   :  { %v2784_v24 = vpop.f32.mrf.mxu1 }
0x11e7   :  { %v2018_v25 = vadd.f32 %v2012_v31, %v3312_v55 }
0x11e8   :  { %v2014_v32 = vpop.f32.mrf.mxu1 }
0x11e9   :  { %v2015_v46 = vadd.f32 %v2547_v22, %v2014_v32  ;;  %v2024_v26 = vsel %vm73_vm0, %v2018_v25, 0.0 }
0x11ea   :  { %2025 = vadd.xlane.f32.xlu0 %v2024_v26  ;;  %v2785_v27 = vpop.f32.mrf.mxu1 }
0x11eb   :  { %v2019_v28 = vadd.f32 %v2015_v46, %v3314_v56  ;;  %v2857_v56 = vld [vmem:[%s3524_s10 + $0x18] sm:$0xff]   ;;  %v2573_v27 = vld [vmem:[%s3527_s13 + $0x1] ss:$0 sm:$0xff] }
0x11ec   :  { %2787 = vmatpush3.bf16.msra.mxu0 %v2857_v56 }
0x11ed   :  { %v2027_v29 = vsel %vm73_vm0, %v2019_v28, 0.0  ;;  %2788 = vmatprep.subr.bf16.mxu0 %v2979_v15 }
0x11ee   :  { %2028 = vadd.xlane.f32.xlu1 %v2027_v29 }
0x11f0   :  { %2789 = vmatpush3.bf16.msra.mxu0 %v2858_v41 }
0x11f1   :  { %2806 = vmatprep.subr.bf16.mxu0 %v2979_v15 }
0x1273   :  { %v2026_v30 = vpop.xlane.xlu0 %2025 }
0x1274   :  { %v2030_v33 = vmul.f32 0.03125, %v2026_v30 }
0x1276   :  { %v2032_v34 = vsub.f32 %v2018_v25, %v2030_v33 }
0x1277   :  { %v2029_v35 = vpop.xlane.xlu1 %2028 }
0x1278   :  { %v2031_v9 = vmul.f32 0.03125, %v2029_v35  ;;  %v2034_v36 = vmul.f32 %v2032_v34, %v2032_v34 }
0x127a   :  { %v2033_v37 = vsub.f32 %v2019_v28, %v2031_v9  ;;  %v2036_v55 = vsel %vm73_vm0, %v2034_v36, 0.0 }
0x127b   :  { %2037 = vadd.xlane.f32.xlu0 %v2036_v55 }
0x127c   :  { %v2035_v38 = vmul.f32 %v2033_v37, %v2033_v37 }
0x127e   :  { %v2039_v39 = vsel %vm73_vm0, %v2035_v38, 0.0 }
0x127f   :  { %2040 = vadd.xlane.f32.xlu0 %v2039_v39 }
0x1304   :  { %v2038_v43 = vpop.xlane.xlu0 %2037 }
0x1305   :  { %v2042_v44 = vmul.f32 0.03125, %v2038_v43 }
0x1307   :  { %v2044_v45 = vadd.f32 1e-12, %v2042_v44 }
0x1308   :  { %v2041_v47 = vpop.xlane.xlu0 %2040 }
0x1309   :  { %2913 = vrsqrt.f32 %v2044_v45  ;;  %v2043_v48 = vmul.f32 0.03125, %v2041_v47 }
0x130b   :  { %v2045_v49 = vadd.f32 1e-12, %v2043_v48 }
0x130d   :  { %2915 = vrsqrt.f32 %v2045_v49 }
0x1316   :  { %v2914_v50 = vpop.eup %2913 }
0x1317   :  { %v2048_v40 = vmul.f32 %v2914_v50, %v2032_v34  ;;  %v2863_v50 = vld [vmem:[%s3530_s16 + $0x8] sm:$0xff]  }
0x1319   :  { %v2056_v54 = vmul.f32 %v2553_v51, %v2048_v40  ;;  %v2864_v40 = vld [vmem:[%s3530_s16] sm:$0xff]  }
0x131a   :  { %v2916_v52 = vpop.eup %2915 }
0x131b   :  { %v2049_v53 = vmul.f32 %v2916_v52, %v2033_v37  ;;  %v2064_v59 = vadd.f32 %v2554_v57, %v2056_v54 }
0x131d   :  { %v2057_v58 = vmul.f32 %v2553_v51, %v2049_v53 }
0x131f   :  { %v2065_v61 = vadd.f32 %v2554_v57, %v2057_v58 }
0x1321   :  { %v2071_v60 = vpack.c.bf16 %v2065_v61, %v2064_v59 }
0x1323   :  { %2791 = vmatmul.mubr.msk.bf16.vlgmr.msra.gmra.mxu0 %vm73_vm0, %v2071_v60 }
0x1324   :  { %2810 = vmatprep.mubr.msk.bf16.mxu0 %vm2980_vm1, %v2979_v15  ;;  %2807 = vmatpush3.bf16.msra.mxu0 %v2863_v50 }
0x1325   :  { %2808 = vmatprep.subr.bf16.mxu0 %v2979_v15 }
0x1328   :  { %2809 = vmatpush3.bf16.msra.mxu0 %v2864_v40 }
0x13e3   :  { %v2129_v4 = vpop.f32.mrf.mxu0 }
0x13e4   :  { %v2130_v5 = vadd.f32 %v2560_v3, %v2129_v4 }
0x13e5   :  { %v2792_v6 = vpop.f32.mrf.mxu0 }
0x13e6   :  { %v2136_v7 = vmul.f32 %v2130_v5, %v2130_v5 }
0x13e7   :  { %v2132_v8 = vpop.f32.mrf.mxu0 }
0x13e8   :  { %v2138_v10 = vmul.f32 %v2136_v7, %v2130_v5  ;;  %v2133_v11 = vadd.f32 %v2560_v3, %v2132_v8  ;;  %v2987_v7 = vmov 0   ;;  %v2583_v8 = vld [vmem:[%s3531_s17] ss:$0 sm:$0xff] }
0x13e9   :  { %v2793_v12 = vpop.f32.mrf.mxu0  ;;  %2842 = vset.pattern.permute.xlu1 %v2987_v7  ;;  %2841 = vset.pattern.permute.xlu0 %v2987_v7 }
0x13ea   :  { %v2140_v13 = vmul.f32 0.044715, %v2138_v10  ;;  %v2137_v2 = vmul.f32 %v2133_v11, %v2133_v11 }
0x13ec   :  { %v2142_v14 = vadd.f32 %v2140_v13, %v2130_v5  ;;  %v2139_v16 = vmul.f32 %v2137_v2, %v2133_v11 }
0x13ee   :  { %v2144_v17 = vmul.f32 0.7978846, %v2142_v14  ;;  %v2141_v18 = vmul.f32 0.044715, %v2139_v16 }
0x13f0   :  { %2917 = vtanh.f32 %v2144_v17  ;;  %v2143_v19 = vadd.f32 %v2141_v18, %v2133_v11  ;;  %v2362_v18 = vld [vmem:[%s3532_s18 + $0x8] sm:$0xff] }
0x13f1   :  { %vm2410_vm9 = vcmp.ne.s32.totalorder %v2362_v18, 4294967196 }
0x13f2   :  { %v2145_v20 = vmul.f32 0.7978846, %v2143_v19  ;;  %v2361_v19 = vld [vmem:[%s3532_s18] sm:$0xff]  ;;  %s2988_s18 = smov [#allocation2]  }
0x13f3   :  { %vm2409_vm8 = vcmp.ne.s32.totalorder %v2361_v19, 4294967196 }
0x13f4   :  { %2919 = vtanh.f32 %v2145_v20 }
0x13fd   :  { %v2918_v21 = vpop.eup %2917 }
0x13fe   :  { %v2148_v22 = vadd.f32 1.0, %v2918_v21 }
0x1400   :  { %v2150_v31 = vmul.f32 0.5, %v2148_v22 }
0x1401   :  { %v2920_v23 = vpop.eup %2919 }
0x1402   :  { %v2149_v24 = vadd.f32 1.0, %v2920_v23  ;;  %v2152_v32 = vmul.f32 %v2150_v31, %v2130_v5 }
0x1404   :  { %v2151_v25 = vmul.f32 0.5, %v2149_v24 }
0x1406   :  { %v2153_v46 = vmul.f32 %v2151_v25, %v2133_v11  ;;  %v2388_v25 = vand.u32 127, %v264_v42 }
0x1408   :  { %v2163_v26 = vpack.c.bf16 %v2153_v46, %v2152_v32 }
0x140a   :  { %2803 = vmatmul.mubr.msk.bf16.vlgmr.msra.gmra.mxu1 %vm1111_vm4, %v2163_v26 }
0x14ca   :  { %v2233_v28 = vpop.f32.mrf.mxu1 }
0x14cb   :  { %v2234_v29 = vadd.f32 %v2573_v27, %v2233_v28 }
0x14cc   :  { %v2804_v30 = vpop.f32.mrf.mxu1 }
0x14cd   :  { %v2240_v33 = vadd.f32 %v2234_v29, %v2064_v59 }
0x14ce   :  { %v2236_v34 = vpop.f32.mrf.mxu1 }
0x14cf   :  { %v2237_v35 = vadd.f32 %v2573_v27, %v2236_v34  ;;  %v2246_v9 = vsel %vm73_vm0, %v2240_v33, 0.0 }
0x14d0   :  { %2247 = vadd.xlane.f32.xlu0 %v2246_v9  ;;  %v2805_v36 = vpop.f32.mrf.mxu1 }
0x14d1   :  { %v2241_v37 = vadd.f32 %v2237_v35, %v2065_v61  ;;  %v2581_v61 = vld [vmem:[%s3528_s14 + $0x1] ss:$0 sm:$0xff] }
0x14d3   :  { %v2249_v55 = vsel %vm73_vm0, %v2241_v37, 0.0 }
0x14d4   :  { %2250 = vadd.xlane.f32.xlu1 %v2249_v55 }
0x1559   :  { %v2248_v38 = vpop.xlane.xlu0 %2247 }
0x155a   :  { %v2252_v39 = vmul.f32 0.03125, %v2248_v38 }
0x155c   :  { %v2254_v56 = vsub.f32 %v2240_v33, %v2252_v39 }
0x155d   :  { %v2251_v41 = vpop.xlane.xlu1 %2250 }
0x155e   :  { %v2253_v43 = vmul.f32 0.03125, %v2251_v41  ;;  %v2256_v44 = vmul.f32 %v2254_v56, %v2254_v56 }
0x1560   :  { %v2255_v45 = vsub.f32 %v2241_v37, %v2253_v43  ;;  %v2258_v47 = vsel %vm73_vm0, %v2256_v44, 0.0 }
0x1561   :  { %2259 = vadd.xlane.f32.xlu0 %v2258_v47 }
0x1562   :  { %v2257_v48 = vmul.f32 %v2255_v45, %v2255_v45 }
0x1564   :  { %v2261_v49 = vsel %vm73_vm0, %v2257_v48, 0.0  ;;  %v2590_v48 = vsel %vm2410_vm9, 1.0, %v2979_v15 }
0x1565   :  { %2262 = vadd.xlane.f32.xlu1 %v2261_v49 }
0x15ea   :  { %v2260_v51 = vpop.xlane.xlu0 %2259 }
0x15eb   :  { %v2264_v52 = vmul.f32 0.03125, %v2260_v51 }
0x15ed   :  { %v2266_v53 = vadd.f32 1e-12, %v2264_v52 }
0x15ee   :  { %v2263_v54 = vpop.xlane.xlu1 %2262 }
0x15ef   :  { %2921 = vrsqrt.f32 %v2266_v53  ;;  %v2265_v57 = vmul.f32 0.03125, %v2263_v54 }
0x15f1   :  { %v2267_v58 = vadd.f32 1e-12, %v2265_v57  ;;  %v2434_v57 = vsel %vm2419_vm10, %v2590_v48, 0.0 }
0x15f3   :  { %2923 = vrsqrt.f32 %v2267_v58 }
0x15fc   :  { %v2922_v59 = vpop.eup %2921 }
0x15fd   :  { %v2270_v60 = vmul.f32 %v2922_v59, %v2254_v56 }
0x15ff   :  { %v2278_v63 = vmul.f32 %v2581_v61, %v2270_v60 }
0x1600   :  { %v2924_v0 = vpop.eup %2923 }
0x1601   :  { %v2271_v1 = vmul.f32 %v2924_v0, %v2255_v45  ;;  %v2286_v3 = vadd.f32 %v2582_v62, %v2278_v63  ;;  %v2589_v45 = vsel %vm2409_vm8, 1.0, %v2979_v15 }
0x1602   :  { %v2433_v54 = vsel %vm2419_vm10, %v2589_v45, 0.0 }
0x1603   :  { %v2279_v4 = vmul.f32 %v2581_v61, %v2271_v1  ;;  %2288 = vst.msk [vmem:[#allocation2] sm:$0xff] %vm73_vm0, %v2286_v3  ;;  %v2435_v59 = vadd.f32 %v2434_v57, %v2433_v54 }
0x1605   :  { %v2287_v5 = vadd.f32 %v2582_v62, %v2279_v4 }
0x1607   :  { %v2294_v6 = vpack.c.bf16 %v2287_v5, %v2286_v3  ;;  %2289 = vst.msk [vmem:[#allocation2 + $0x8] sm:$0xff] %vm73_vm0, %v2287_v5 }
0x1609   :  { %2811 = vmatmul.mubr.msk.bf16.vlgmr.msra.gmra.mxu0 %vm73_vm0, %v2294_v6 }
0x16c9   :  { %v2351_v10 = vpop.f32.mrf.mxu0 }
0x16ca   :  { %v2352_v11 = vadd.f32 %v2583_v8, %v2351_v10 }
0x16cb   :  { %v2812_v12 = vpop.f32.mrf.mxu0 }
0x16cc   :  { %2359 = vst.msk [vmem:[%s3534_s20] sm:$0xff] %vm2358_vm5, %v2352_v11  ;;  %v2363_v13 = vsel %vm2358_vm5, %v2352_v11, -inf }
0x16cd   :  { %2364 = vmax.xlane.f32.xlu0 %v2363_v13  ;;  %v2354_v2 = vpop.f32.mrf.mxu0 }
0x16ce   :  { %v2355_v14 = vadd.f32 %v2583_v8, %v2354_v2 }
0x16cf   :  { %v2813_v16 = vpop.f32.mrf.mxu0 }
0x16d0   :  { %2360 = vst.msk [vmem:[%s3534_s20 + $0x8] sm:$0xff] %vm2358_vm5, %v2355_v14  ;;  %v2366_v17 = vsel %vm2358_vm5, %v2355_v14, -inf  ;;  %s2456_s20 = sshll.u32 %s2988_s18, 4  ;;  %s2457_s20 = int_to_ptr.vmem [resolvable:$true] %s2456_s20 }
0x16d1   :  { %2367 = vmax.xlane.f32.xlu1 %v2366_v17  ;;  %s2935_s30 = scalar_lea.vmem %s2457_s20, 256  ;;  %p2940_p1 = scmp.lt.s32.totalorder %s2457_s20, %s2457_s20 }
0x16d2   :  { %p2936_p0 = scmp.ne.s32.totalorder %s2457_s20, %s2935_s30  ;;  %p2941_p2 = scmp.lt.s32.totalorder %s2935_s30, %s2935_s30 }
0x16d4   :  { %p2942_p3 = por %p2941_p2, %p2940_p1 }
0x16d6   :  { %p2943_p4 = pnand %p2942_p3, %p2936_p0 }
0x16e2   :  { %2393 = vperm.xlu1 %2842, %v2362_v18  }
0x16e3   :  { %2390 = vperm.xlu0 %2841, %v2361_v19  }
0x1756   :  { %v2365_v20 = vpop.xlane.xlu0 %2364 }
0x1757   :  { %v2369_v21 = vsub.f32 %v2352_v11, %v2365_v20 }
0x1759   :  { %v2371_v22 = vmul.f32 1.442695, %v2369_v21 }
0x175a   :  { %v2368_v23 = vpop.xlane.xlu1 %2367 }
0x175b   :  { %2925 = vpow2.f32 %v2371_v22  ;;  %v2370_v31 = vsub.f32 %v2355_v14, %v2368_v23 }
0x175d   :  { %v2373_v24 = vmul.f32 1.442695, %v2370_v31 }
0x175e   :  { %v2391_v32 = vpop.permute.xlu0 %2390  ;;  %v2394_v46 = vpop.permute.xlu1 %2393 }
0x175f   :  { %2927 = vpow2.f32 %v2373_v24  ;;  %vm2395_vm6 = vcmp.eq.s32.totalorder %v2388_v25, %v2391_v32  ;;  %vm2396_vm7 = vcmp.eq.s32.totalorder %v2388_v25, %v2394_v46 }
0x1760   :  { %v2587_v26 = vsel %vm2395_vm6, 1.0, %v2979_v15  ;;  %v2588_v30 = vsel %vm2396_vm7, 1.0, %v2979_v15 }
0x1761   :  { %v2401_v29 = vmul.f32 %v2587_v26, %v2352_v11  ;;  %v2402_v9 = vmul.f32 %v2588_v30, %v2355_v14 }
0x1763   :  { %v2403_v34 = vsel %vm2358_vm5, %v2401_v29, 0.0  ;;  %v2406_v42 = vsel %vm2358_vm5, %v2402_v9, 0.0 }
0x1768   :  { %v2926_v27 = vpop.eup %2925 }
0x1769   :  { %v2375_v28 = vsel %vm2358_vm5, %v2926_v27, 0.0 }
0x176a   :  { %2376 = vadd.xlane.f32.xlu1 %v2375_v28 }
0x176c   :  { %v2928_v33 = vpop.eup %2927 }
0x176d   :  { %v2378_v35 = vsel %vm2358_vm5, %v2928_v33, 0.0 }
0x176e   :  { %2404 = vadd.xlane.f32.xlu1 %v2403_v34  ;;  %2379 = vadd.xlane.f32.xlu0 %v2378_v35 }
0x1772   :  { %2407 = vadd.xlane.f32.xlu1 %v2406_v42 }
0x17f3   :  { %v2377_v36 = vpop.xlane.xlu1 %2376 }
0x17f4   :  { %2929 = vlog2.f32 %v2377_v36 }
0x17f7   :  { %v2380_v37 = vpop.xlane.xlu0 %2379  ;;  %v2405_v39 = vpop.xlane.xlu1 %2404 }
0x17f8   :  { %2931 = vlog2.f32 %v2380_v37 }
0x17fb   :  { %v2408_v49 = vpop.xlane.xlu1 %2407 }
0x1801   :  { %v2930_v55 = vpop.eup %2929 }
0x1802   :  { %v2382_v38 = vmul.f32 0.6931472, %v2930_v55 }
0x1804   :  { %v2385_v56 = vadd.f32 %v2382_v38, %v2365_v20 }
0x1805   :  { %v2932_v41 = vpop.eup %2931 }
0x1806   :  { %v2384_v43 = vmul.f32 0.6931472, %v2932_v41  ;;  %v2415_v44 = vsub.f32 %v2385_v56, %v2405_v39 }
0x1808   :  { %v2386_v47 = vadd.f32 %v2384_v43, %v2368_v23  ;;  %v2417_v50 = vmul.f32 %v2589_v45, %v2415_v44 }
0x180a   :  { %v2416_v40 = vsub.f32 %v2386_v47, %v2408_v49  ;;  %v2420_v52 = vsel %vm2419_vm10, %v2417_v50, 0.0 }
0x180c   :  { %v2418_v51 = vmul.f32 %v2590_v48, %v2416_v40 }
0x180e   :  { %v2421_v53 = vsel %vm2419_vm10, %v2418_v51, 0.0 }
0x180f   :  { %v2422_v58 = vadd.f32 %v2421_v53, %v2420_v52 }
0x1811   :  { %2423 = vadd.xlane.f32.xlu1 %v2422_v58 }
0x1815   :  { %2436 = vadd.xlane.f32.xlu1 %v2435_v59 }
0x1816   :  { %2946 = shalt.err (!%p2943_p4)
}
0x1817   :  { %s2989_s9 = smov 128   ;;  %s2990_s5 = smov 8   ;;  %vm2449_vm11 = vcmask 0  }
0x1818   :  { %2462 = dma.vmem_to_hbm [thread:$0]  %s2457_s20, 256, %s3533_s19, [#allocation3], %s2989_s9, %s2989_s9, %s2990_s5  }
0x1819   :  { %s2991_s19 = smov [#allocation4]  }
0x181a   :  { %s2471_s11 = sshll.u32 %s2991_s19, 4  ;;  %s2472_s11 = int_to_ptr.vmem [resolvable:$true] %s2471_s11 }
0x181b   :  { %s2955_s12 = scalar_lea.vmem %s2472_s11, 16  ;;  %s2959_s13 = scalar_lea.vmem %s2472_s11, 32 }
0x181c   :  { %p2956_p5 = scmp.ne.s32.totalorder %s2472_s11, %s2955_s12  ;;  %p2960_p6 = scmp.lt.s32.totalorder %s2472_s11, %s2472_s11 }
0x181d   :  { %p2961_p7 = scmp.lt.s32.totalorder %s2959_s13, %s2955_s12 }
0x181f   :  { %p2962_p8 = por %p2961_p7, %p2960_p6 }
0x1821   :  { %p2963_p9 = pnand %p2962_p8, %p2956_p5 }
0x189a   :  { %v2424_v15 = vpop.xlane.xlu1 %2423 }
0x189b   :  { %v2425_v61 = vrot.slane %v2424_v15, 4 }
0x189d   :  { %v2426_v60 = vadd.f32 %v2425_v61, %v2424_v15 }
0x189e   :  { %v2437_v62 = vpop.xlane.xlu1 %2436 }
0x189f   :  { %v2427_v63 = vrot.slane %v2426_v60, 2  ;;  %v2438_v0 = vrot.slane %v2437_v62, 4 }
0x18a1   :  { %v2439_v1 = vadd.f32 %v2438_v0, %v2437_v62  ;;  %v2428_v3 = vadd.f32 %v2427_v63, %v2426_v60 }
0x18a3   :  { %v2440_v4 = vrot.slane %v2439_v1, 2  ;;  %v2429_v5 = vrot.slane %v2428_v3, 1 }
0x18a5   :  { %v2441_v6 = vadd.f32 %v2440_v4, %v2439_v1  ;;  %v2430_v7 = vadd.f32 %v2429_v5, %v2428_v3 }
0x18a7   :  { %2814 = vpush %v2430_v7  ;;  %v2442_v8 = vrot.slane %v2441_v6, 1 }
0x18a9   :  { %v2443_v10 = vadd.f32 %v2442_v8, %v2441_v6 }
0x18ab   :  { %2816 = vpush %v2443_v10 }
0x18d8   :  { %s2815_s28 = spop %2814 }
0x18d9   :  { %v2432_v2 = vstv %s2815_s28 }
0x18dc   :  { %s2817_s29 = spop %2816 }
0x18dd   :  { %v2445_v11 = vstv %s2817_s29 }
0x18de   :  { %v2446_v12 = vmax.f32 %v2445_v11, 1.0 }
0x18e0   :  { %2933 = vrcp.f32 %v2446_v12 }
0x18ed   :  { %v2934_v13 = vpop.eup %2933 }
0x18ee   :  { %v2448_v14 = vmul.f32 %v2934_v13, %v2432_v2 }
0x18f0   :  { %2450 = vst.msk [vmem:[#allocation4] sm:$0x1] %vm2449_vm11, %v2448_v14 }
0x18f1   :  { %2966 = shalt.err (!%p2963_p9)
}
0x18f2   :  { %2474 = dma.vmem_to_hbm [thread:$0]  %s2472_s11, 16, %s3535_s21, [#allocation5]  }
0x18f3   :  { %2975 = dma.done.wait [#allocation3], 256  }
0x18f4   :  { %2976 = vsyncadd [#allocation3], 4294967040 }
0x18f5   :  { %2977 = dma.done.wait [#allocation5], 16  }
0x18f6   :  { %2978 = vsyncadd [#allocation5], 4294967280 }
0x18f7   :  { %2483 = vsyncpa [#allocation3], 1 }
0x18f8   :  { %2484 = vsyncpa [#allocation5], 1 }

</bundles_post_ra>
